<compile_context>
chip_gen: v7x
topology: tpu7x:2x2x1
jax: 0.10.0
libtpu: 0.0.40
codegen_flags: <defaults>
</compile_context>

<pallas_src>
import jax
import jax.numpy as jnp
from jax.experimental import pallas as pl
from jax.experimental.pallas import tpu as pltpu

SUBLANE = 8      # native sublane granularity (batch padded to this)
LANE = 128       # per-gate lane padding (each gate occupies a full 128-lane block)


def gru_fc_kernel(x_ref,     # (S*8, C)   bf16, time-major, rows b>=B are zero
                  wi_ref,    # (C, 3*Hp)  bf16, gate g at cols [g*Hp, g*Hp+H)
                  wh_ref,    # (Hp, 3*Hp) bf16, rows H:Hp zero, same gate layout
                  bi_ref,    # (1, 3*Hp)  f32  [b_ir+b_hr | b_iz+b_hz | b_in], zero-padded
                  bhn_ref,   # (1, Hp)    f32  b_hn, zero-padded
                  fcw_ref,   # (Hp, 1)    f32, rows H:Hp zero
                  fcb_ref,   # (1, 1)     f32
                  out_ref):  # (B, 1)     f32
    SB = x_ref.shape[0]
    Hp3 = wh_ref.shape[1]
    Hp = Hp3 // 3
    B = out_ref.shape[0]
    S = SB // SUBLANE

    w_h = wh_ref[...]                                    # (Hp, 3Hp) bf16

    # Hoisted input projection: one matmul covering every timestep, off the
    # sequential critical path. Fused r/z biases + b_in added once here.
    xproj = (jnp.dot(x_ref[...], wi_ref[...],
                     preferred_element_type=jnp.float32)
             + jnp.broadcast_to(bi_ref[...], (SB, Hp3)))  # (S*8, 3Hp) f32

    # Hoist the (1,Hp)->(8,Hp) broadcast out of the loop (no CSE of broadcasts).
    b_hn = jnp.broadcast_to(bhn_ref[...], (SUBLANE, Hp))

    # Recurrence: h lives in vregs as a full (8, 128) tile; one bf16 MXU op per
    # step; every slice below is whole-vreg (sublane- and lane-) aligned.
    # Padded sublanes (b>=B) and padded lanes (>=H) stay exactly zero.
    h = jnp.zeros((SUBLANE, Hp), jnp.float32)
    for t in range(S):
        xp = xproj[t * SUBLANE:(t + 1) * SUBLANE, :]                 # (8, 3Hp)
        hp = jnp.dot(h.astype(jnp.bfloat16), w_h,
                     preferred_element_type=jnp.float32)             # (8, 3Hp)
        # sigmoid(x) == 0.5*(1 + tanh(0.5*x)): single EUP push per gate.
        r = 0.5 * (1.0 + jnp.tanh(0.5 * (xp[:, 0:Hp] + hp[:, 0:Hp])))
        z = 0.5 * (1.0 + jnp.tanh(0.5 * (xp[:, Hp:2 * Hp] + hp[:, Hp:2 * Hp])))
        n = jnp.tanh(xp[:, 2 * Hp:3 * Hp] + r * (hp[:, 2 * Hp:3 * Hp] + b_hn))
        h = (1.0 - z) * n + z * h

    # fc(last hidden state); only the first B (valid) rows are stored.
    out = jnp.dot(h, fcw_ref[...], preferred_element_type=jnp.float32)  # (8, 1)
    out_ref[...] = out[0:B, :] + fcb_ref[...]


def fpl_predictor_pallas(x_bsc, params):
    """x_bsc: (B, S, C) float32, PyTorch batch_first convention. Returns (B, 1)."""
    B, S, C = x_bsc.shape

    # Time-major, sublane-padded, bf16 rows: row t*8 + b holds x[b, t, :]; rows
    # b>=B are zero. Transpose+pad+cast fused into a single construction.
    x_tb = (jnp.zeros((S, SUBLANE, C), jnp.bfloat16)
            .at[:, :B, :]
            .set(jnp.transpose(x_bsc, (1, 0, 2)).astype(jnp.bfloat16))
            .reshape(S * SUBLANE, C))

    vmem = lambda: pl.BlockSpec(memory_space=pltpu.MemorySpace.VMEM)
    args = (
        x_tb,
        params["w_i"], params["w_h"],
        params["b_i"], params["b_hn"],
        params["fc_w"], params["fc_b"],
    )
    return pl.pallas_call(
        gru_fc_kernel,
        out_shape=jax.ShapeDtypeStruct((B, 1), jnp.float32),
        in_specs=[vmem() for _ in args],
        out_specs=vmem(),
    )(*args)


def make_params(key, num_channels, hidden=32):
    """Deterministic synthetic parameters; same shapes as torch GRU + Linear,
    re-laid-out into the lane-padded fused layout the kernel consumes."""
    C, H, Hp = num_channels, hidden, LANE
    k = 1.0 / jnp.sqrt(jnp.float32(H))
    keys = jax.random.split(key, 8)
    u = lambda kk, shape: jax.random.uniform(kk, shape, jnp.float32, -k, k)

    w_ih = u(keys[0], (3 * H, C))      # torch weight_ih_l0, gate order [r, z, n]
    w_hh = u(keys[1], (3 * H, H))      # torch weight_hh_l0
    b_ih = u(keys[2], (3 * H,))
    b_hh = u(keys[3], (3 * H,))
    fc_w = u(keys[4], (1, H))          # torch Linear weight
    fc_b = u(keys[5], (1,))

    # Lane-padded fused layout: gate g occupies columns [g*Hp, g*Hp + H);
    # all other columns (and w_h rows >= H) are zero.
    w_i = jnp.zeros((C, 3 * Hp), jnp.float32)
    w_h = jnp.zeros((Hp, 3 * Hp), jnp.float32)
    for g in range(3):
        w_i = w_i.at[:, g * Hp:g * Hp + H].set(w_ih[g * H:(g + 1) * H].T)
        w_h = w_h.at[:H, g * Hp:g * Hp + H].set(w_hh[g * H:(g + 1) * H].T)

    # r/z gate biases fuse (b_i + b_h); n-gate keeps b_in and b_hn separate
    # (torch GRU: n = tanh(W_in x + b_in + r * (W_hn h + b_hn))).
    b_i = jnp.zeros((1, 3 * Hp), jnp.float32)
    b_i = b_i.at[0, 0 * Hp:0 * Hp + H].set(b_ih[0:H] + b_hh[0:H])
    b_i = b_i.at[0, 1 * Hp:1 * Hp + H].set(b_ih[H:2 * H] + b_hh[H:2 * H])
    b_i = b_i.at[0, 2 * Hp:2 * Hp + H].set(b_ih[2 * H:3 * H])
    b_hn = jnp.zeros((1, Hp), jnp.float32).at[0, :H].set(b_hh[2 * H:3 * H])
    fcw = jnp.zeros((Hp, 1), jnp.float32).at[:H, :].set(fc_w.T)

    params = {
        "w_i": w_i.astype(jnp.bfloat16),   # bf16 MXU operands, f32 accumulation
        "w_h": w_h.astype(jnp.bfloat16),
        "b_i": b_i, "b_hn": b_hn,
        "fc_w": fcw,
        "fc_b": fc_b.reshape(1, 1),
    }
    raw = (w_ih, w_hh, b_ih, b_hh, fc_w, fc_b)
    return params, raw


def fpl_predictor_ref(x_bsc, raw):
    """Pure-JAX f32 reference mirroring torch.nn.GRU + Linear semantics."""
    w_ih, w_hh, b_ih, b_hh, fc_w, fc_b = raw
    B, S, C = x_bsc.shape
    H = w_hh.shape[1]
    w_ir, w_iz, w_in = w_ih[:H], w_ih[H:2 * H], w_ih[2 * H:]
    w_hr, w_hz, w_hn = w_hh[:H], w_hh[H:2 * H], w_hh[2 * H:]
    b_ir, b_iz, b_in = b_ih[:H], b_ih[H:2 * H], b_ih[2 * H:]
    b_hr, b_hz, b_hn = b_hh[:H], b_hh[H:2 * H], b_hh[2 * H:]

    h = jnp.zeros((B, H), jnp.float32)
    for t in range(S):
        xt = x_bsc[:, t, :]
        r = jax.nn.sigmoid(xt @ w_ir.T + b_ir + h @ w_hr.T + b_hr)
        z = jax.nn.sigmoid(xt @ w_iz.T + b_iz + h @ w_hz.T + b_hz)
        n = jnp.tanh(xt @ w_in.T + b_in + r * (h @ w_hn.T + b_hn))
        h = (1.0 - z) * n + z * h
    return h @ fc_w.T + fc_b


if __name__ == "__main__":
    key = jax.random.PRNGKey(0)
    k_x, k_p = jax.random.split(key)

    B, S, C = 2, 8, 4            # batch=2, seq=8, num_channels=4
    x = jax.random.normal(k_x, (B, S, C), jnp.float32)

    params, raw = make_params(k_p, num_channels=C, hidden=32)

    out = fpl_predictor_pallas(x, params)
    out = jax.block_until_ready(out)

    ref = fpl_predictor_ref(x, raw)
    assert out.shape == (B, 1)
    # bf16 matmul operands (f32 accumulation) -> looser tolerance than pure f32.
    assert jnp.allclose(out, ref, atol=5e-2, rtol=5e-2), (out, ref)

    print("KERNEL_OK")
</pallas_src>

<mosaic_0001>
module attributes {stable_mosaic.version = 11 : i64} {
  func.func @gru_fc_kernel(%arg0: memref<64x4xbf16, #tpu.memory_space<vmem>>, %arg1: memref<4x384xbf16, #tpu.memory_space<vmem>>, %arg2: memref<128x384xbf16, #tpu.memory_space<vmem>>, %arg3: memref<1x384xf32, #tpu.memory_space<vmem>>, %arg4: memref<1x128xf32, #tpu.memory_space<vmem>>, %arg5: memref<128x1xf32, #tpu.memory_space<vmem>>, %arg6: memref<1x1xf32, #tpu.memory_space<vmem>>, %arg7: memref<2x1xf32, #tpu.memory_space<vmem>>) attributes {dimension_semantics = [], scalar_prefetch = 0 : i64, scratch_operands = 0 : i64, tpu.core_type = #tpu.core_type<tc>} {
    %c0 = arith.constant 0 : index
    %c0_0 = arith.constant 0 : index
    %0 = vector.load %arg2[%c0, %c0_0] : memref<128x384xbf16, #tpu.memory_space<vmem>>, vector<128x384xbf16>
    %c0_1 = arith.constant 0 : index
    %c0_2 = arith.constant 0 : index
    %1 = vector.load %arg0[%c0_1, %c0_2] : memref<64x4xbf16, #tpu.memory_space<vmem>>, vector<64x4xbf16>
    %c0_3 = arith.constant 0 : index
    %c0_4 = arith.constant 0 : index
    %2 = vector.load %arg1[%c0_3, %c0_4] : memref<4x384xbf16, #tpu.memory_space<vmem>>, vector<4x384xbf16>
    %cst = arith.constant dense<0.000000e+00> : vector<64x384xf32>
    %3 = tpu.matmul %1, %2, %cst {dimension_numbers = #tpu.dot_dimension_numbers<[1], [0], [0], [1], [0, 0, 1, 1], [], []>} : vector<64x4xbf16>, vector<4x384xbf16>, vector<64x384xf32> -> vector<64x384xf32>
    %c0_5 = arith.constant 0 : index
    %c0_6 = arith.constant 0 : index
    %4 = vector.load %arg3[%c0_5, %c0_6] : memref<1x384xf32, #tpu.memory_space<vmem>>, vector<1x384xf32>
    %5 = vector.shape_cast %4 : vector<1x384xf32> to vector<1x384xf32>
    %6 = vector.broadcast %5 : vector<1x384xf32> to vector<64x384xf32>
    %7 = arith.addf %3, %6 : vector<64x384xf32>
    %c0_7 = arith.constant 0 : index
    %c0_8 = arith.constant 0 : index
    %8 = vector.load %arg4[%c0_7, %c0_8] : memref<1x128xf32, #tpu.memory_space<vmem>>, vector<1x128xf32>
    %9 = vector.shape_cast %8 : vector<1x128xf32> to vector<1x128xf32>
    %10 = vector.broadcast %9 : vector<1x128xf32> to vector<8x128xf32>
    %cst_9 = arith.constant 0.000000e+00 : f32
    %11 = vector.broadcast %cst_9 : f32 to vector<8x128xf32>
    %12 = vector.extract_strided_slice %7 {offsets = [0, 0], sizes = [8, 384], strides = [1, 1]} : vector<64x384xf32> to vector<8x384xf32>
    %13 = arith.truncf %11 : vector<8x128xf32> to vector<8x128xbf16>
    %cst_10 = arith.constant dense<0.000000e+00> : vector<8x384xf32>
    %14 = tpu.matmul %13, %0, %cst_10 {dimension_numbers = #tpu.dot_dimension_numbers<[1], [0], [0], [1], [0, 0, 1, 1], [], []>} : vector<8x128xbf16>, vector<128x384xbf16>, vector<8x384xf32> -> vector<8x384xf32>
    %15 = vector.extract_strided_slice %12 {offsets = [0, 0], sizes = [8, 128], strides = [1, 1]} : vector<8x384xf32> to vector<8x128xf32>
    %16 = vector.extract_strided_slice %14 {offsets = [0, 0], sizes = [8, 128], strides = [1, 1]} : vector<8x384xf32> to vector<8x128xf32>
    %17 = arith.addf %15, %16 : vector<8x128xf32>
    %cst_11 = arith.constant 5.000000e-01 : f32
    %18 = vector.broadcast %cst_11 : f32 to vector<8x128xf32>
    %19 = arith.mulf %18, %17 : vector<8x128xf32>
    %20 = math.tanh %19 : vector<8x128xf32>
    %cst_12 = arith.constant 1.000000e+00 : f32
    %21 = vector.broadcast %cst_12 : f32 to vector<8x128xf32>
    %22 = arith.addf %21, %20 : vector<8x128xf32>
    %cst_13 = arith.constant 5.000000e-01 : f32
    %23 = vector.broadcast %cst_13 : f32 to vector<8x128xf32>
    %24 = arith.mulf %23, %22 : vector<8x128xf32>
    %25 = vector.extract_strided_slice %12 {offsets = [0, 128], sizes = [8, 128], strides = [1, 1]} : vector<8x384xf32> to vector<8x128xf32>
    %26 = vector.extract_strided_slice %14 {offsets = [0, 128], sizes = [8, 128], strides = [1, 1]} : vector<8x384xf32> to vector<8x128xf32>
    %27 = arith.addf %25, %26 : vector<8x128xf32>
    %cst_14 = arith.constant 5.000000e-01 : f32
    %28 = vector.broadcast %cst_14 : f32 to vector<8x128xf32>
    %29 = arith.mulf %28, %27 : vector<8x128xf32>
    %30 = math.tanh %29 : vector<8x128xf32>
    %cst_15 = arith.constant 1.000000e+00 : f32
    %31 = vector.broadcast %cst_15 : f32 to vector<8x128xf32>
    %32 = arith.addf %31, %30 : vector<8x128xf32>
    %cst_16 = arith.constant 5.000000e-01 : f32
    %33 = vector.broadcast %cst_16 : f32 to vector<8x128xf32>
    %34 = arith.mulf %33, %32 : vector<8x128xf32>
    %35 = vector.extract_strided_slice %12 {offsets = [0, 256], sizes = [8, 128], strides = [1, 1]} : vector<8x384xf32> to vector<8x128xf32>
    %36 = vector.extract_strided_slice %14 {offsets = [0, 256], sizes = [8, 128], strides = [1, 1]} : vector<8x384xf32> to vector<8x128xf32>
    %37 = arith.addf %36, %10 : vector<8x128xf32>
    %38 = arith.mulf %24, %37 : vector<8x128xf32>
    %39 = arith.addf %35, %38 : vector<8x128xf32>
    %40 = math.tanh %39 : vector<8x128xf32>
    %cst_17 = arith.constant 1.000000e+00 : f32
    %41 = vector.broadcast %cst_17 : f32 to vector<8x128xf32>
    %42 = arith.subf %41, %34 : vector<8x128xf32>
    %43 = arith.mulf %42, %40 : vector<8x128xf32>
    %44 = arith.mulf %34, %11 : vector<8x128xf32>
    %45 = arith.addf %43, %44 : vector<8x128xf32>
    %46 = vector.extract_strided_slice %7 {offsets = [8, 0], sizes = [8, 384], strides = [1, 1]} : vector<64x384xf32> to vector<8x384xf32>
    %47 = arith.truncf %45 : vector<8x128xf32> to vector<8x128xbf16>
    %cst_18 = arith.constant dense<0.000000e+00> : vector<8x384xf32>
    %48 = tpu.matmul %47, %0, %cst_18 {dimension_numbers = #tpu.dot_dimension_numbers<[1], [0], [0], [1], [0, 0, 1, 1], [], []>} : vector<8x128xbf16>, vector<128x384xbf16>, vector<8x384xf32> -> vector<8x384xf32>
    %49 = vector.extract_strided_slice %46 {offsets = [0, 0], sizes = [8, 128], strides = [1, 1]} : vector<8x384xf32> to vector<8x128xf32>
    %50 = vector.extract_strided_slice %48 {offsets = [0, 0], sizes = [8, 128], strides = [1, 1]} : vector<8x384xf32> to vector<8x128xf32>
    %51 = arith.addf %49, %50 : vector<8x128xf32>
    %cst_19 = arith.constant 5.000000e-01 : f32
    %52 = vector.broadcast %cst_19 : f32 to vector<8x128xf32>
    %53 = arith.mulf %52, %51 : vector<8x128xf32>
    %54 = math.tanh %53 : vector<8x128xf32>
    %cst_20 = arith.constant 1.000000e+00 : f32
    %55 = vector.broadcast %cst_20 : f32 to vector<8x128xf32>
    %56 = arith.addf %55, %54 : vector<8x128xf32>
    %cst_21 = arith.constant 5.000000e-01 : f32
    %57 = vector.broadcast %cst_21 : f32 to vector<8x128xf32>
    %58 = arith.mulf %57, %56 : vector<8x128xf32>
    %59 = vector.extract_strided_slice %46 {offsets = [0, 128], sizes = [8, 128], strides = [1, 1]} : vector<8x384xf32> to vector<8x128xf32>
    %60 = vector.extract_strided_slice %48 {offsets = [0, 128], sizes = [8, 128], strides = [1, 1]} : vector<8x384xf32> to vector<8x128xf32>
    %61 = arith.addf %59, %60 : vector<8x128xf32>
    %cst_22 = arith.constant 5.000000e-01 : f32
    %62 = vector.broadcast %cst_22 : f32 to vector<8x128xf32>
    %63 = arith.mulf %62, %61 : vector<8x128xf32>
    %64 = math.tanh %63 : vector<8x128xf32>
    %cst_23 = arith.constant 1.000000e+00 : f32
    %65 = vector.broadcast %cst_23 : f32 to vector<8x128xf32>
    %66 = arith.addf %65, %64 : vector<8x128xf32>
    %cst_24 = arith.constant 5.000000e-01 : f32
    %67 = vector.broadcast %cst_24 : f32 to vector<8x128xf32>
    %68 = arith.mulf %67, %66 : vector<8x128xf32>
    %69 = vector.extract_strided_slice %46 {offsets = [0, 256], sizes = [8, 128], strides = [1, 1]} : vector<8x384xf32> to vector<8x128xf32>
    %70 = vector.extract_strided_slice %48 {offsets = [0, 256], sizes = [8, 128], strides = [1, 1]} : vector<8x384xf32> to vector<8x128xf32>
    %71 = arith.addf %70, %10 : vector<8x128xf32>
    %72 = arith.mulf %58, %71 : vector<8x128xf32>
    %73 = arith.addf %69, %72 : vector<8x128xf32>
    %74 = math.tanh %73 : vector<8x128xf32>
    %cst_25 = arith.constant 1.000000e+00 : f32
    %75 = vector.broadcast %cst_25 : f32 to vector<8x128xf32>
    %76 = arith.subf %75, %68 : vector<8x128xf32>
    %77 = arith.mulf %76, %74 : vector<8x128xf32>
    %78 = arith.mulf %68, %45 : vector<8x128xf32>
    %79 = arith.addf %77, %78 : vector<8x128xf32>
    %80 = vector.extract_strided_slice %7 {offsets = [16, 0], sizes = [8, 384], strides = [1, 1]} : vector<64x384xf32> to vector<8x384xf32>
    %81 = arith.truncf %79 : vector<8x128xf32> to vector<8x128xbf16>
    %cst_26 = arith.constant dense<0.000000e+00> : vector<8x384xf32>
    %82 = tpu.matmul %81, %0, %cst_26 {dimension_numbers = #tpu.dot_dimension_numbers<[1], [0], [0], [1], [0, 0, 1, 1], [], []>} : vector<8x128xbf16>, vector<128x384xbf16>, vector<8x384xf32> -> vector<8x384xf32>
    %83 = vector.extract_strided_slice %80 {offsets = [0, 0], sizes = [8, 128], strides = [1, 1]} : vector<8x384xf32> to vector<8x128xf32>
    %84 = vector.extract_strided_slice %82 {offsets = [0, 0], sizes = [8, 128], strides = [1, 1]} : vector<8x384xf32> to vector<8x128xf32>
    %85 = arith.addf %83, %84 : vector<8x128xf32>
    %cst_27 = arith.constant 5.000000e-01 : f32
    %86 = vector.broadcast %cst_27 : f32 to vector<8x128xf32>
    %87 = arith.mulf %86, %85 : vector<8x128xf32>
    %88 = math.tanh %87 : vector<8x128xf32>
    %cst_28 = arith.constant 1.000000e+00 : f32
    %89 = vector.broadcast %cst_28 : f32 to vector<8x128xf32>
    %90 = arith.addf %89, %88 : vector<8x128xf32>
    %cst_29 = arith.constant 5.000000e-01 : f32
    %91 = vector.broadcast %cst_29 : f32 to vector<8x128xf32>
    %92 = arith.mulf %91, %90 : vector<8x128xf32>
    %93 = vector.extract_strided_slice %80 {offsets = [0, 128], sizes = [8, 128], strides = [1, 1]} : vector<8x384xf32> to vector<8x128xf32>
    %94 = vector.extract_strided_slice %82 {offsets = [0, 128], sizes = [8, 128], strides = [1, 1]} : vector<8x384xf32> to vector<8x128xf32>
    %95 = arith.addf %93, %94 : vector<8x128xf32>
    %cst_30 = arith.constant 5.000000e-01 : f32
    %96 = vector.broadcast %cst_30 : f32 to vector<8x128xf32>
    %97 = arith.mulf %96, %95 : vector<8x128xf32>
    %98 = math.tanh %97 : vector<8x128xf32>
    %cst_31 = arith.constant 1.000000e+00 : f32
    %99 = vector.broadcast %cst_31 : f32 to vector<8x128xf32>
    %100 = arith.addf %99, %98 : vector<8x128xf32>
    %cst_32 = arith.constant 5.000000e-01 : f32
    %101 = vector.broadcast %cst_32 : f32 to vector<8x128xf32>
    %102 = arith.mulf %101, %100 : vector<8x128xf32>
    %103 = vector.extract_strided_slice %80 {offsets = [0, 256], sizes = [8, 128], strides = [1, 1]} : vector<8x384xf32> to vector<8x128xf32>
    %104 = vector.extract_strided_slice %82 {offsets = [0, 256], sizes = [8, 128], strides = [1, 1]} : vector<8x384xf32> to vector<8x128xf32>
    %105 = arith.addf %104, %10 : vector<8x128xf32>
    %106 = arith.mulf %92, %105 : vector<8x128xf32>
    %107 = arith.addf %103, %106 : vector<8x128xf32>
    %108 = math.tanh %107 : vector<8x128xf32>
    %cst_33 = arith.constant 1.000000e+00 : f32
    %109 = vector.broadcast %cst_33 : f32 to vector<8x128xf32>
    %110 = arith.subf %109, %102 : vector<8x128xf32>
    %111 = arith.mulf %110, %108 : vector<8x128xf32>
    %112 = arith.mulf %102, %79 : vector<8x128xf32>
    %113 = arith.addf %111, %112 : vector<8x128xf32>
    %114 = vector.extract_strided_slice %7 {offsets = [24, 0], sizes = [8, 384], strides = [1, 1]} : vector<64x384xf32> to vector<8x384xf32>
    %115 = arith.truncf %113 : vector<8x128xf32> to vector<8x128xbf16>
    %cst_34 = arith.constant dense<0.000000e+00> : vector<8x384xf32>
    %116 = tpu.matmul %115, %0, %cst_34 {dimension_numbers = #tpu.dot_dimension_numbers<[1], [0], [0], [1], [0, 0, 1, 1], [], []>} : vector<8x128xbf16>, vector<128x384xbf16>, vector<8x384xf32> -> vector<8x384xf32>
    %117 = vector.extract_strided_slice %114 {offsets = [0, 0], sizes = [8, 128], strides = [1, 1]} : vector<8x384xf32> to vector<8x128xf32>
    %118 = vector.extract_strided_slice %116 {offsets = [0, 0], sizes = [8, 128], strides = [1, 1]} : vector<8x384xf32> to vector<8x128xf32>
    %119 = arith.addf %117, %118 : vector<8x128xf32>
    %cst_35 = arith.constant 5.000000e-01 : f32
    %120 = vector.broadcast %cst_35 : f32 to vector<8x128xf32>
    %121 = arith.mulf %120, %119 : vector<8x128xf32>
    %122 = math.tanh %121 : vector<8x128xf32>
    %cst_36 = arith.constant 1.000000e+00 : f32
    %123 = vector.broadcast %cst_36 : f32 to vector<8x128xf32>
    %124 = arith.addf %123, %122 : vector<8x128xf32>
    %cst_37 = arith.constant 5.000000e-01 : f32
    %125 = vector.broadcast %cst_37 : f32 to vector<8x128xf32>
    %126 = arith.mulf %125, %124 : vector<8x128xf32>
    %127 = vector.extract_strided_slice %114 {offsets = [0, 128], sizes = [8, 128], strides = [1, 1]} : vector<8x384xf32> to vector<8x128xf32>
    %128 = vector.extract_strided_slice %116 {offsets = [0, 128], sizes = [8, 128], strides = [1, 1]} : vector<8x384xf32> to vector<8x128xf32>
    %129 = arith.addf %127, %128 : vector<8x128xf32>
    %cst_38 = arith.constant 5.000000e-01 : f32
    %130 = vector.broadcast %cst_38 : f32 to vector<8x128xf32>
    %131 = arith.mulf %130, %129 : vector<8x128xf32>
    %132 = math.tanh %131 : vector<8x128xf32>
    %cst_39 = arith.constant 1.000000e+00 : f32
    %133 = vector.broadcast %cst_39 : f32 to vector<8x128xf32>
    %134 = arith.addf %133, %132 : vector<8x128xf32>
    %cst_40 = arith.constant 5.000000e-01 : f32
    %135 = vector.broadcast %cst_40 : f32 to vector<8x128xf32>
    %136 = arith.mulf %135, %134 : vector<8x128xf32>
    %137 = vector.extract_strided_slice %114 {offsets = [0, 256], sizes = [8, 128], strides = [1, 1]} : vector<8x384xf32> to vector<8x128xf32>
    %138 = vector.extract_strided_slice %116 {offsets = [0, 256], sizes = [8, 128], strides = [1, 1]} : vector<8x384xf32> to vector<8x128xf32>
    %139 = arith.addf %138, %10 : vector<8x128xf32>
    %140 = arith.mulf %126, %139 : vector<8x128xf32>
    %141 = arith.addf %137, %140 : vector<8x128xf32>
    %142 = math.tanh %141 : vector<8x128xf32>
    %cst_41 = arith.constant 1.000000e+00 : f32
    %143 = vector.broadcast %cst_41 : f32 to vector<8x128xf32>
    %144 = arith.subf %143, %136 : vector<8x128xf32>
    %145 = arith.mulf %144, %142 : vector<8x128xf32>
    %146 = arith.mulf %136, %113 : vector<8x128xf32>
    %147 = arith.addf %145, %146 : vector<8x128xf32>
    %148 = vector.extract_strided_slice %7 {offsets = [32, 0], sizes = [8, 384], strides = [1, 1]} : vector<64x384xf32> to vector<8x384xf32>
    %149 = arith.truncf %147 : vector<8x128xf32> to vector<8x128xbf16>
    %cst_42 = arith.constant dense<0.000000e+00> : vector<8x384xf32>
    %150 = tpu.matmul %149, %0, %cst_42 {dimension_numbers = #tpu.dot_dimension_numbers<[1], [0], [0], [1], [0, 0, 1, 1], [], []>} : vector<8x128xbf16>, vector<128x384xbf16>, vector<8x384xf32> -> vector<8x384xf32>
    %151 = vector.extract_strided_slice %148 {offsets = [0, 0], sizes = [8, 128], strides = [1, 1]} : vector<8x384xf32> to vector<8x128xf32>
    %152 = vector.extract_strided_slice %150 {offsets = [0, 0], sizes = [8, 128], strides = [1, 1]} : vector<8x384xf32> to vector<8x128xf32>
    %153 = arith.addf %151, %152 : vector<8x128xf32>
    %cst_43 = arith.constant 5.000000e-01 : f32
    %154 = vector.broadcast %cst_43 : f32 to vector<8x128xf32>
    %155 = arith.mulf %154, %153 : vector<8x128xf32>
    %156 = math.tanh %155 : vector<8x128xf32>
    %cst_44 = arith.constant 1.000000e+00 : f32
    %157 = vector.broadcast %cst_44 : f32 to vector<8x128xf32>
    %158 = arith.addf %157, %156 : vector<8x128xf32>
    %cst_45 = arith.constant 5.000000e-01 : f32
    %159 = vector.broadcast %cst_45 : f32 to vector<8x128xf32>
    %160 = arith.mulf %159, %158 : vector<8x128xf32>
    %161 = vector.extract_strided_slice %148 {offsets = [0, 128], sizes = [8, 128], strides = [1, 1]} : vector<8x384xf32> to vector<8x128xf32>
    %162 = vector.extract_strided_slice %150 {offsets = [0, 128], sizes = [8, 128], strides = [1, 1]} : vector<8x384xf32> to vector<8x128xf32>
    %163 = arith.addf %161, %162 : vector<8x128xf32>
    %cst_46 = arith.constant 5.000000e-01 : f32
    %164 = vector.broadcast %cst_46 : f32 to vector<8x128xf32>
    %165 = arith.mulf %164, %163 : vector<8x128xf32>
    %166 = math.tanh %165 : vector<8x128xf32>
    %cst_47 = arith.constant 1.000000e+00 : f32
    %167 = vector.broadcast %cst_47 : f32 to vector<8x128xf32>
    %168 = arith.addf %167, %166 : vector<8x128xf32>
    %cst_48 = arith.constant 5.000000e-01 : f32
    %169 = vector.broadcast %cst_48 : f32 to vector<8x128xf32>
    %170 = arith.mulf %169, %168 : vector<8x128xf32>
    %171 = vector.extract_strided_slice %148 {offsets = [0, 256], sizes = [8, 128], strides = [1, 1]} : vector<8x384xf32> to vector<8x128xf32>
    %172 = vector.extract_strided_slice %150 {offsets = [0, 256], sizes = [8, 128], strides = [1, 1]} : vector<8x384xf32> to vector<8x128xf32>
    %173 = arith.addf %172, %10 : vector<8x128xf32>
    %174 = arith.mulf %160, %173 : vector<8x128xf32>
    %175 = arith.addf %171, %174 : vector<8x128xf32>
    %176 = math.tanh %175 : vector<8x128xf32>
    %cst_49 = arith.constant 1.000000e+00 : f32
    %177 = vector.broadcast %cst_49 : f32 to vector<8x128xf32>
    %178 = arith.subf %177, %170 : vector<8x128xf32>
    %179 = arith.mulf %178, %176 : vector<8x128xf32>
    %180 = arith.mulf %170, %147 : vector<8x128xf32>
    %181 = arith.addf %179, %180 : vector<8x128xf32>
    %182 = vector.extract_strided_slice %7 {offsets = [40, 0], sizes = [8, 384], strides = [1, 1]} : vector<64x384xf32> to vector<8x384xf32>
    %183 = arith.truncf %181 : vector<8x128xf32> to vector<8x128xbf16>
    %cst_50 = arith.constant dense<0.000000e+00> : vector<8x384xf32>
    %184 = tpu.matmul %183, %0, %cst_50 {dimension_numbers = #tpu.dot_dimension_numbers<[1], [0], [0], [1], [0, 0, 1, 1], [], []>} : vector<8x128xbf16>, vector<128x384xbf16>, vector<8x384xf32> -> vector<8x384xf32>
    %185 = vector.extract_strided_slice %182 {offsets = [0, 0], sizes = [8, 128], strides = [1, 1]} : vector<8x384xf32> to vector<8x128xf32>
    %186 = vector.extract_strided_slice %184 {offsets = [0, 0], sizes = [8, 128], strides = [1, 1]} : vector<8x384xf32> to vector<8x128xf32>
    %187 = arith.addf %185, %186 : vector<8x128xf32>
    %cst_51 = arith.constant 5.000000e-01 : f32
    %188 = vector.broadcast %cst_51 : f32 to vector<8x128xf32>
    %189 = arith.mulf %188, %187 : vector<8x128xf32>
    %190 = math.tanh %189 : vector<8x128xf32>
    %cst_52 = arith.constant 1.000000e+00 : f32
    %191 = vector.broadcast %cst_52 : f32 to vector<8x128xf32>
    %192 = arith.addf %191, %190 : vector<8x128xf32>
    %cst_53 = arith.constant 5.000000e-01 : f32
    %193 = vector.broadcast %cst_53 : f32 to vector<8x128xf32>
    %194 = arith.mulf %193, %192 : vector<8x128xf32>
    %195 = vector.extract_strided_slice %182 {offsets = [0, 128], sizes = [8, 128], strides = [1, 1]} : vector<8x384xf32> to vector<8x128xf32>
    %196 = vector.extract_strided_slice %184 {offsets = [0, 128], sizes = [8, 128], strides = [1, 1]} : vector<8x384xf32> to vector<8x128xf32>
    %197 = arith.addf %195, %196 : vector<8x128xf32>
    %cst_54 = arith.constant 5.000000e-01 : f32
    %198 = vector.broadcast %cst_54 : f32 to vector<8x128xf32>
    %199 = arith.mulf %198, %197 : vector<8x128xf32>
    %200 = math.tanh %199 : vector<8x128xf32>
    %cst_55 = arith.constant 1.000000e+00 : f32
    %201 = vector.broadcast %cst_55 : f32 to vector<8x128xf32>
    %202 = arith.addf %201, %200 : vector<8x128xf32>
    %cst_56 = arith.constant 5.000000e-01 : f32
    %203 = vector.broadcast %cst_56 : f32 to vector<8x128xf32>
    %204 = arith.mulf %203, %202 : vector<8x128xf32>
    %205 = vector.extract_strided_slice %182 {offsets = [0, 256], sizes = [8, 128], strides = [1, 1]} : vector<8x384xf32> to vector<8x128xf32>
    %206 = vector.extract_strided_slice %184 {offsets = [0, 256], sizes = [8, 128], strides = [1, 1]} : vector<8x384xf32> to vector<8x128xf32>
    %207 = arith.addf %206, %10 : vector<8x128xf32>
    %208 = arith.mulf %194, %207 : vector<8x128xf32>
    %209 = arith.addf %205, %208 : vector<8x128xf32>
    %210 = math.tanh %209 : vector<8x128xf32>
    %cst_57 = arith.constant 1.000000e+00 : f32
    %211 = vector.broadcast %cst_57 : f32 to vector<8x128xf32>
    %212 = arith.subf %211, %204 : vector<8x128xf32>
    %213 = arith.mulf %212, %210 : vector<8x128xf32>
    %214 = arith.mulf %204, %181 : vector<8x128xf32>
    %215 = arith.addf %213, %214 : vector<8x128xf32>
    %216 = vector.extract_strided_slice %7 {offsets = [48, 0], sizes = [8, 384], strides = [1, 1]} : vector<64x384xf32> to vector<8x384xf32>
    %217 = arith.truncf %215 : vector<8x128xf32> to vector<8x128xbf16>
    %cst_58 = arith.constant dense<0.000000e+00> : vector<8x384xf32>
    %218 = tpu.matmul %217, %0, %cst_58 {dimension_numbers = #tpu.dot_dimension_numbers<[1], [0], [0], [1], [0, 0, 1, 1], [], []>} : vector<8x128xbf16>, vector<128x384xbf16>, vector<8x384xf32> -> vector<8x384xf32>
    %219 = vector.extract_strided_slice %216 {offsets = [0, 0], sizes = [8, 128], strides = [1, 1]} : vector<8x384xf32> to vector<8x128xf32>
    %220 = vector.extract_strided_slice %218 {offsets = [0, 0], sizes = [8, 128], strides = [1, 1]} : vector<8x384xf32> to vector<8x128xf32>
    %221 = arith.addf %219, %220 : vector<8x128xf32>
    %cst_59 = arith.constant 5.000000e-01 : f32
    %222 = vector.broadcast %cst_59 : f32 to vector<8x128xf32>
    %223 = arith.mulf %222, %221 : vector<8x128xf32>
    %224 = math.tanh %223 : vector<8x128xf32>
    %cst_60 = arith.constant 1.000000e+00 : f32
    %225 = vector.broadcast %cst_60 : f32 to vector<8x128xf32>
    %226 = arith.addf %225, %224 : vector<8x128xf32>
    %cst_61 = arith.constant 5.000000e-01 : f32
    %227 = vector.broadcast %cst_61 : f32 to vector<8x128xf32>
    %228 = arith.mulf %227, %226 : vector<8x128xf32>
    %229 = vector.extract_strided_slice %216 {offsets = [0, 128], sizes = [8, 128], strides = [1, 1]} : vector<8x384xf32> to vector<8x128xf32>
    %230 = vector.extract_strided_slice %218 {offsets = [0, 128], sizes = [8, 128], strides = [1, 1]} : vector<8x384xf32> to vector<8x128xf32>
    %231 = arith.addf %229, %230 : vector<8x128xf32>
    %cst_62 = arith.constant 5.000000e-01 : f32
    %232 = vector.broadcast %cst_62 : f32 to vector<8x128xf32>
    %233 = arith.mulf %232, %231 : vector<8x128xf32>
    %234 = math.tanh %233 : vector<8x128xf32>
    %cst_63 = arith.constant 1.000000e+00 : f32
    %235 = vector.broadcast %cst_63 : f32 to vector<8x128xf32>
    %236 = arith.addf %235, %234 : vector<8x128xf32>
    %cst_64 = arith.constant 5.000000e-01 : f32
    %237 = vector.broadcast %cst_64 : f32 to vector<8x128xf32>
    %238 = arith.mulf %237, %236 : vector<8x128xf32>
    %239 = vector.extract_strided_slice %216 {offsets = [0, 256], sizes = [8, 128], strides = [1, 1]} : vector<8x384xf32> to vector<8x128xf32>
    %240 = vector.extract_strided_slice %218 {offsets = [0, 256], sizes = [8, 128], strides = [1, 1]} : vector<8x384xf32> to vector<8x128xf32>
    %241 = arith.addf %240, %10 : vector<8x128xf32>
    %242 = arith.mulf %228, %241 : vector<8x128xf32>
    %243 = arith.addf %239, %242 : vector<8x128xf32>
    %244 = math.tanh %243 : vector<8x128xf32>
    %cst_65 = arith.constant 1.000000e+00 : f32
    %245 = vector.broadcast %cst_65 : f32 to vector<8x128xf32>
    %246 = arith.subf %245, %238 : vector<8x128xf32>
    %247 = arith.mulf %246, %244 : vector<8x128xf32>
    %248 = arith.mulf %238, %215 : vector<8x128xf32>
    %249 = arith.addf %247, %248 : vector<8x128xf32>
    %250 = vector.extract_strided_slice %7 {offsets = [56, 0], sizes = [8, 384], strides = [1, 1]} : vector<64x384xf32> to vector<8x384xf32>
    %251 = arith.truncf %249 : vector<8x128xf32> to vector<8x128xbf16>
    %cst_66 = arith.constant dense<0.000000e+00> : vector<8x384xf32>
    %252 = tpu.matmul %251, %0, %cst_66 {dimension_numbers = #tpu.dot_dimension_numbers<[1], [0], [0], [1], [0, 0, 1, 1], [], []>} : vector<8x128xbf16>, vector<128x384xbf16>, vector<8x384xf32> -> vector<8x384xf32>
    %253 = vector.extract_strided_slice %250 {offsets = [0, 0], sizes = [8, 128], strides = [1, 1]} : vector<8x384xf32> to vector<8x128xf32>
    %254 = vector.extract_strided_slice %252 {offsets = [0, 0], sizes = [8, 128], strides = [1, 1]} : vector<8x384xf32> to vector<8x128xf32>
    %255 = arith.addf %253, %254 : vector<8x128xf32>
    %cst_67 = arith.constant 5.000000e-01 : f32
    %256 = vector.broadcast %cst_67 : f32 to vector<8x128xf32>
    %257 = arith.mulf %256, %255 : vector<8x128xf32>
    %258 = math.tanh %257 : vector<8x128xf32>
    %cst_68 = arith.constant 1.000000e+00 : f32
    %259 = vector.broadcast %cst_68 : f32 to vector<8x128xf32>
    %260 = arith.addf %259, %258 : vector<8x128xf32>
    %cst_69 = arith.constant 5.000000e-01 : f32
    %261 = vector.broadcast %cst_69 : f32 to vector<8x128xf32>
    %262 = arith.mulf %261, %260 : vector<8x128xf32>
    %263 = vector.extract_strided_slice %250 {offsets = [0, 128], sizes = [8, 128], strides = [1, 1]} : vector<8x384xf32> to vector<8x128xf32>
    %264 = vector.extract_strided_slice %252 {offsets = [0, 128], sizes = [8, 128], strides = [1, 1]} : vector<8x384xf32> to vector<8x128xf32>
    %265 = arith.addf %263, %264 : vector<8x128xf32>
    %cst_70 = arith.constant 5.000000e-01 : f32
    %266 = vector.broadcast %cst_70 : f32 to vector<8x128xf32>
    %267 = arith.mulf %266, %265 : vector<8x128xf32>
    %268 = math.tanh %267 : vector<8x128xf32>
    %cst_71 = arith.constant 1.000000e+00 : f32
    %269 = vector.broadcast %cst_71 : f32 to vector<8x128xf32>
    %270 = arith.addf %269, %268 : vector<8x128xf32>
    %cst_72 = arith.constant 5.000000e-01 : f32
    %271 = vector.broadcast %cst_72 : f32 to vector<8x128xf32>
    %272 = arith.mulf %271, %270 : vector<8x128xf32>
    %273 = vector.extract_strided_slice %250 {offsets = [0, 256], sizes = [8, 128], strides = [1, 1]} : vector<8x384xf32> to vector<8x128xf32>
    %274 = vector.extract_strided_slice %252 {offsets = [0, 256], sizes = [8, 128], strides = [1, 1]} : vector<8x384xf32> to vector<8x128xf32>
    %275 = arith.addf %274, %10 : vector<8x128xf32>
    %276 = arith.mulf %262, %275 : vector<8x128xf32>
    %277 = arith.addf %273, %276 : vector<8x128xf32>
    %278 = math.tanh %277 : vector<8x128xf32>
    %cst_73 = arith.constant 1.000000e+00 : f32
    %279 = vector.broadcast %cst_73 : f32 to vector<8x128xf32>
    %280 = arith.subf %279, %272 : vector<8x128xf32>
    %281 = arith.mulf %280, %278 : vector<8x128xf32>
    %282 = arith.mulf %272, %249 : vector<8x128xf32>
    %283 = arith.addf %281, %282 : vector<8x128xf32>
    %c0_74 = arith.constant 0 : index
    %c0_75 = arith.constant 0 : index
    %284 = vector.load %arg5[%c0_74, %c0_75] : memref<128x1xf32, #tpu.memory_space<vmem>>, vector<128x1xf32>
    %cst_76 = arith.constant dense<0.000000e+00> : vector<8x1xf32>
    %285 = tpu.matmul %283, %284, %cst_76 {dimension_numbers = #tpu.dot_dimension_numbers<[1], [0], [0], [1], [0, 0, 1, 1], [], []>} : vector<8x128xf32>, vector<128x1xf32>, vector<8x1xf32> -> vector<8x1xf32>
    %286 = vector.extract_strided_slice %285 {offsets = [0, 0], sizes = [2, 1], strides = [1, 1]} : vector<8x1xf32> to vector<2x1xf32>
    %c0_77 = arith.constant 0 : index
    %c0_78 = arith.constant 0 : index
    %287 = vector.load %arg6[%c0_77, %c0_78] : memref<1x1xf32, #tpu.memory_space<vmem>>, vector<1x1xf32>
    %288 = vector.broadcast %287 : vector<1x1xf32> to vector<2x1xf32>
    %289 = arith.addf %286, %288 : vector<2x1xf32>
    %c0_79 = arith.constant 0 : index
    %c0_80 = arith.constant 0 : index
    %290 = vector.load %arg7[%c0_79, %c0_80] : memref<2x1xf32, #tpu.memory_space<vmem>>, vector<2x1xf32>
    tpu.vector_store %arg7[%c0_79, %c0_80], %289 {strides = array<i32>} : memref<2x1xf32, #tpu.memory_space<vmem>>, vector<2x1xf32>,
    return
  }
}

</mosaic_0001>

<bundles_post_ra>
// kernel: tpu_custom_call.1
= control target key start
LH: loop header
LB: loop body
LE: loop exit
PB: predicated region body
PF: predicated region fallthrough
CT: control target
= control target key end

     0   :  { %s2407_s0 = inlined_call_operand.vmem [shape: bf16[64,4], index: 0, kind: input, shape index: {}]   ;;  %s2408_s1 = inlined_call_operand.vmem [shape: bf16[4,384], index: 1, kind: input, shape index: {}]   ;;  %s2409_s2 = inlined_call_operand.hbm [shape: bf16[128,384], index: 2, kind: input, shape index: {}]   ;;  %s2410_s3 = inlined_call_operand.vmem [shape: f32[1,384], index: 3, kind: input, shape index: {}]   ;;  %s2411_s4 = inlined_call_operand.vmem [shape: f32[1,128], index: 4, kind: input, shape index: {}]   ;;  %s2412_s5 = inlined_call_operand.vmem [shape: f32[128,1], index: 5, kind: input, shape index: {}]   ;;  %s2413_s6 = inlined_call_operand.<no memory space> [shape: f32[1,1], index: 6, kind: input, shape index: {}]   ;;  %s2414_s7 = inlined_call_operand.vmem [shape: f32[2,1], index: 7, kind: output, shape index: {}]  }
   0x1   :  { %v12_v0 = vstv %s2413_s6 }
   0x2   :  { %13 = vst [vmem:[#allocation2] sm:$0x1] %v12_v0 }
   0x3   :  { %14 = vsyncpa [#allocation4], 0  ;;  %s1827_s26 = smov [#allocation3]   ;;  %s1803_s30 = scalar_lea.hbm %s2409_s2, 3072 }
   0x4   :  { %s24_s27 = sshll.u32 %s1827_s26, 4  ;;  %p1804_p0 = scmp.ne.s32.totalorder %s2409_s2, %s1803_s30  ;;  %s25_s27 = int_to_ptr.vmem [resolvable:$true] %s24_s27 }
   0x5   :  { %p1807_p1 = scmp.lt.u32.totalorder %s1803_s30, %s2409_s2 }
   0x7   :  { %p1809_p2 = pnand %p1807_p1, %p1804_p0 }
   0x9   :  { %1812 = shalt.err (!%p1809_p2)
}
   0xa   :  { %s1813_s6 = scalar_lea.vmem %s25_s27, 3072  ;;  %p1818_p4 = scmp.lt.s32.totalorder %s25_s27, %s25_s27 }
   0xb   :  { %p1814_p3 = scmp.ne.s32.totalorder %s25_s27, %s1813_s6  ;;  %p1819_p5 = scmp.lt.s32.totalorder %s1813_s6, %s1813_s6 }
   0xd   :  { %p1820_p6 = por %p1819_p5, %p1818_p4 }
   0xf   :  { %p1821_p7 = pnand %p1820_p6, %p1814_p3 }
  0x11   :  { %1824 = shalt.err (!%p1821_p7)
}
  0x12   :  { %s1828_s12 = smov 192   ;;  %s1829_s13 = smov 12  }
  0x13   :  { %30 = dma.hbm_to_vmem [thread:$0]  %s2409_s2, 3072, %s25_s27, [#allocation4], %s1828_s12, %s1828_s12, %s1829_s13  }
  0x14   :  { %1825 = dma.done.wait [#allocation4], 3072  }
  0x15   :  { %1826 = vsyncadd [#allocation4], 4294964224  ;;  %v86_v1 = vlaneseq  ;;  %v1830_v2 = vmov 1983009808   ;;  %v2415_v4 = vmov 0   ;;  %vm151_vm0 = vcmask 1041408  }
  0x16   :  { %v124_v3 = vunpack.c.l.s4 %v1830_v2  ;;  %193 = vmatprep.mubr.bf16.mxu0 %v2415_v4  ;;  %v83_v8 = vld [vmem:[%s2408_s1] sm:$0x3f]  ;;  %vm138_vm1 = vcmask 31744   ;;  %v1712_v20 = vld [vmem:[%s2407_s0 + $0x8] sm:$0xff]   ;;  %v2417_v21 = vmov 0.0   ;;  %v1720_v22 = vld [vmem:[%s2407_s0 + $0x10] sm:$0xff]  }
  0x17   :  { %v1891_v5 = vshrl.u32 %v86_v1, 7  ;;  %v1705_v10 = vld [vmem:[%s2407_s0] sm:$0xff]   ;;  %v122_v11 = vcombine.high %v83_v8, %v83_v8  ;;  %v1920_v23 = vld [vmem:[#allocation3 + $0x8] ss:$12 sps:$4 sm:$0xff]   ;;  %v1935_v27 = vld [vmem:[#allocation3 + $0x4c] ss:$12 sps:$4 sm:$0xff]  }
  0x18   :  { %v125_v6 = vunpack.c.0.s8 %v124_v3  ;;  %v1900_v14 = vld [vmem:[#allocation3 + $0x4] ss:$12 sps:$4 sm:$0xff]   ;;  %1469 = vmatprep.mubr.msk.bf16.mxu1 %vm138_vm1, %v1705_v10  ;;  %v1903_v16 = vld [vmem:[#allocation3] ss:$12 sps:$4 sm:$0xff]   ;;  %v1906_v18 = vld [vmem:[#allocation3 + $0x1c] ss:$12 sps:$4 sm:$0xff]  }
  0x19   :  { %v1908_v19 = vld [vmem:[#allocation3 + $0x18] ss:$12 sps:$4 sm:$0xff]   ;;  %v1923_v24 = vld [vmem:[#allocation3 + $0x34] ss:$12 sps:$4 sm:$0xff]   ;;  %v1932_v26 = vld [vmem:[#allocation3 + $0x30] ss:$12 sps:$4 sm:$0xff]  }
  0x1a   :  { %v128_v7 = vsub.s32 %v125_v6, %v1891_v5  ;;  %v1929_v25 = vld [vmem:[#allocation3 + $0x20] ss:$12 sps:$4 sm:$0xff]   ;;  %v1938_v28 = vld [vmem:[#allocation3 + $0x38] ss:$12 sps:$4 sm:$0xff]   ;;  %v1946_v30 = vld [vmem:[#allocation3 + $0x48] ss:$12 sps:$4 sm:$0xff]  }
  0x1b   :  { %v1729_v29 = vld [vmem:[%s2407_s0 + $0x18] sm:$0xff]   ;;  %v1950_v31 = vld [vmem:[#allocation3 + $0x64] ss:$12 sps:$4 sm:$0xff]   ;;  %vm1833_vm2 = vmmov 0   ;;  %v1960_v33 = vld [vmem:[#allocation3 + $0x60] ss:$12 sps:$4 sm:$0xff]  }
  0x1c   :  { %v129_v9 = vrot.slane %v83_v8, %v128_v7  ;;  %v136_v15 = vrot.slane %v122_v11, %v128_v7  ;;  %v1954_v32 = vld [vmem:[#allocation3 + $0x50] ss:$12 sps:$4 sm:$0xff]   ;;  %v1966_v35 = vld [vmem:[#allocation3 + $0x68] ss:$12 sps:$4 sm:$0xff]   ;;  %v1971_v36 = vld [vmem:[#allocation3 + $0x78] ss:$12 sps:$4 sm:$0xff]  }
  0x1d   :  { %v1963_v34 = vld [vmem:[#allocation3 + $0x7c] ss:$12 sps:$4 sm:$0xff]   ;;  %v1975_v37 = vld [vmem:[#allocation3 + $0x94] ss:$12 sps:$4 sm:$0xff]   ;;  %v1985_v40 = vld [vmem:[#allocation3 + $0xac] ss:$12 sps:$4 sm:$0xff]  }
  0x1e   :  { %v137_v12 = vcombine.high %v129_v9, %v129_v9  ;;  %v153_v13 = vsel %vm151_vm0, %v129_v9, 0  ;;  %1696 = vmatprep.subr.msk.bf16.mxu1 %vm151_vm0, %v136_v15  ;;  %v159_v17 = vsel %vm151_vm0, %v136_v15, 0  ;;  %v1978_v38 = vld [vmem:[#allocation3 + $0x80] ss:$12 sps:$4 sm:$0xff]   ;;  %v1982_v39 = vld [vmem:[#allocation3 + $0x90] ss:$12 sps:$4 sm:$0xff]  }
  0x1f   :  { %1468 = vmatpush3.bf16.msra.mxu1 %v159_v17  ;;  %v1988_v41 = vld [vmem:[#allocation3 + $0x98] ss:$12 sps:$4 sm:$0xff]   ;;  %v1993_v42 = vld [vmem:[#allocation3 + $0xa8] ss:$12 sps:$4 sm:$0xff]   ;;  %v1998_v43 = vld [vmem:[#allocation3 + $0xb0] ss:$12 sps:$4 sm:$0xff]  }
  0x20   :  { %1338 = vmatprep.subr.msk.bf16.mxu0 %vm151_vm0, %v137_v12  ;;  %1477 = vmatprep.subr.bf16.mxu1 %v2417_v21  ;;  %v88_v44 = vsub.s32 0, %v1891_v5  ;;  %v84_v45 = vld [vmem:[%s2410_s3] sm:$0x7]  ;;  %v92_v46 = vsub.s32 1, %v1891_v5  ;;  %v96_v47 = vsub.s32 2, %v1891_v5  ;;  %vm1327_vm3 = vcmask 1024  }
  0x21   :  { %162 = vmatpush1.bf16.msra.mxu0 %v153_v13 }
  0x22   :  { %434 = vmatprep.subr.bf16.mxu0 %v1900_v14  ;;  %1470 = vmatmul.mubr.msk.bf16.vlgmr.msra.gmra.mrb[0].mxu1 %vm138_vm1, %v1712_v20  ;;  %v89_v48 = vrot.slane %v84_v45, %v88_v44  ;;  %v93_v49 = vrot.slane %v84_v45, %v92_v46  ;;  %v97_v50 = vrot.slane %v84_v45, %v96_v47 }
  0x23   :  { %1478 = vmatpush3.bf16.msra.mxu1 %v1920_v23  ;;  %1473 = vmatprep.mubr.msk.bf16.mxu1 %vm138_vm1, %v1720_v22 }
  0x24   :  { %1339 = vmatmul.mubr.msk.bf16.vlgmr.msra.gmra.mrb[0].mxu0 %vm138_vm1, %v1705_v10  ;;  %1479 = vmatprep.subr.bf16.mxu1 %v2417_v21 }
  0x25   :  { %435 = vmatpush1.bf16.msra.mxu0 %v1903_v16  ;;  %203 = vmatprep.mubr.bf16.mxu0 %v2415_v4 }
  0x26   :  { %436 = vmatprep.subr.bf16.mxu0 %v1906_v18 }
  0x27   :  { %1480 = vmatpush3.bf16.msra.mxu1 %v1929_v25 }
  0x28   :  { %1481 = vmatprep.subr.bf16.mxu1 %v2417_v21 }
  0x29   :  { %437 = vmatpush1.bf16.msra.mxu0 %v1908_v19 }
  0x2a   :  { %438 = vmatprep.subr.bf16.mxu0 %v1923_v24  ;;  %1474 = vmatmul.mubr.msk.bf16.gmra.mrb[4].mxu1 %vm138_vm1, %v1729_v29 }
  0x2b   :  { %1482 = vmatpush3.bf16.msra.mxu1 %v1938_v28  ;;  %1493 = vmatprep.mubr.msk.bf16.mxu1 %vm1833_vm2, %v2417_v21 }
  0x2c   :  { %1340 = vmatmul.mubr.msk.bf16.gmra.mrb[4].mxu0 %vm138_vm1, %v1712_v20  ;;  %1483 = vmatprep.subr.bf16.mxu1 %v2417_v21 }
  0x2d   :  { %439 = vmatpush1.bf16.msra.mxu0 %v1932_v26  ;;  %213 = vmatprep.mubr.bf16.mxu0 %v2415_v4 }
  0x2e   :  { %440 = vmatprep.subr.bf16.mxu0 %v1935_v27 }
  0x2f   :  { %1484 = vmatpush3.bf16.msra.mxu1 %v1954_v32 }
  0x30   :  { %1485 = vmatprep.subr.bf16.mxu1 %v2417_v21 }
  0x31   :  { %441 = vmatpush1.bf16.msra.mxu0 %v1946_v30 }
  0x32   :  { %442 = vmatprep.subr.bf16.mxu0 %v1950_v31 }
  0x33   :  { %1486 = vmatpush3.bf16.msra.mxu1 %v1966_v35 }
  0x34   :  { %1341 = vmatmul.mubr.msk.bf16.gmra.mrb[8].mxu0 %vm138_vm1, %v1720_v22  ;;  %1487 = vmatprep.subr.bf16.mxu1 %v2417_v21 }
  0x35   :  { %443 = vmatpush1.bf16.msra.mxu0 %v1960_v33  ;;  %223 = vmatprep.mubr.bf16.mxu0 %v2415_v4 }
  0x36   :  { %444 = vmatprep.subr.bf16.mxu0 %v1963_v34 }
  0x37   :  { %1488 = vmatpush3.bf16.msra.mxu1 %v1978_v38 }
  0x38   :  { %1489 = vmatprep.subr.bf16.mxu1 %v2417_v21 }
  0x39   :  { %445 = vmatpush1.bf16.msra.mxu0 %v1971_v36 }
  0x3a   :  { %446 = vmatprep.subr.bf16.mxu0 %v1975_v37 }
  0x3b   :  { %1490 = vmatpush3.bf16.msra.mxu1 %v1988_v41 }
  0x3c   :  { %1342 = vmatmul.mubr.msk.bf16.gmra.mrb[12].mxu0 %vm138_vm1, %v1729_v29  ;;  %1491 = vmatprep.subr.bf16.mxu1 %v2417_v21 }
  0x3d   :  { %447 = vmatpush1.bf16.msra.mxu0 %v1982_v39  ;;  %466 = vmatprep.mubr.bf16.mxu0 %v2415_v4 }
  0x3e   :  { %448 = vmatprep.subr.bf16.mxu0 %v1985_v40 }
  0x3f   :  { %1492 = vmatpush3.bf16.msra.mxu1 %v1998_v43 }
  0x40   :  { %1497 = vmatprep.subr.bf16.mxu1 %v2417_v21 }
  0x41   :  { %449 = vmatpush1.bf16.msra.mxu0 %v1993_v42 }
  0x42   :  { %534 = vmatprep.subr.bf16.mxu0 %v1900_v14  ;;  %1494 = vmatmul.mubr.bf16.vlgmr.msra.gmra.mrb[8].mxu1 %v2415_v4 }
  0x43   :  { %1498 = vmatpush3.bf16.msra.mxu1 %v1920_v23  ;;  %1513 = vmatprep.mubr.msk.bf16.mxu1 %vm1833_vm2, %v2417_v21 }
  0x44   :  { %467 = vmatmul.mubr.bf16.vlgmr.msra.gmra.mrb[16].mxu0 %v2415_v4  ;;  %1499 = vmatprep.subr.bf16.mxu1 %v2417_v21 }
  0x45   :  { %535 = vmatpush1.bf16.msra.mxu0 %v1903_v16  ;;  %566 = vmatprep.mubr.bf16.mxu0 %v2415_v4 }
  0x46   :  { %536 = vmatprep.subr.bf16.mxu0 %v1906_v18 }
  0x47   :  { %1500 = vmatpush3.bf16.msra.mxu1 %v1929_v25 }
  0x48   :  { %1501 = vmatprep.subr.bf16.mxu1 %v2417_v21 }
  0x49   :  { %537 = vmatpush1.bf16.msra.mxu0 %v1908_v19 }
  0x4a   :  { %538 = vmatprep.subr.bf16.mxu0 %v1923_v24 }
  0x4b   :  { %1502 = vmatpush3.bf16.msra.mxu1 %v1938_v28 }
  0x4c   :  { %1503 = vmatprep.subr.bf16.mxu1 %v2417_v21 }
  0x4d   :  { %539 = vmatpush1.bf16.msra.mxu0 %v1932_v26 }
  0x4e   :  { %540 = vmatprep.subr.bf16.mxu0 %v1935_v27 }
  0x4f   :  { %1504 = vmatpush3.bf16.msra.mxu1 %v1954_v32 }
  0x50   :  { %1505 = vmatprep.subr.bf16.mxu1 %v2417_v21 }
  0x51   :  { %541 = vmatpush1.bf16.msra.mxu0 %v1946_v30 }
  0x52   :  { %542 = vmatprep.subr.bf16.mxu0 %v1950_v31 }
  0x53   :  { %1506 = vmatpush3.bf16.msra.mxu1 %v1966_v35 }
  0x54   :  { %1507 = vmatprep.subr.bf16.mxu1 %v2417_v21 }
  0x55   :  { %543 = vmatpush1.bf16.msra.mxu0 %v1960_v33 }
  0x56   :  { %544 = vmatprep.subr.bf16.mxu0 %v1963_v34 }
  0x57   :  { %1508 = vmatpush3.bf16.msra.mxu1 %v1978_v38 }
  0x58   :  { %1509 = vmatprep.subr.bf16.mxu1 %v2417_v21 }
  0x59   :  { %545 = vmatpush1.bf16.msra.mxu0 %v1971_v36 }
  0x5a   :  { %546 = vmatprep.subr.bf16.mxu0 %v1975_v37 }
  0x5b   :  { %1510 = vmatpush3.bf16.msra.mxu1 %v1988_v41 }
  0x5c   :  { %1511 = vmatprep.subr.bf16.mxu1 %v2417_v21 }
  0x5d   :  { %547 = vmatpush1.bf16.msra.mxu0 %v1982_v39 }
  0x5e   :  { %548 = vmatprep.subr.bf16.mxu0 %v1985_v40 }
  0x5f   :  { %1512 = vmatpush3.bf16.msra.mxu1 %v1998_v43 }
  0x60   :  { %1517 = vmatprep.subr.bf16.mxu1 %v2417_v21 }
  0x61   :  { %549 = vmatpush1.bf16.msra.mxu0 %v1993_v42 }
  0x62   :  { %634 = vmatprep.subr.bf16.mxu0 %v1900_v14 }
  0xf5   :  { %v1471_v56 = vpop.f32.mrb[0].mxu1 }
  0xf6   :  { %v2050_v59 = vadd.f32 %v1471_v56, %v97_v50  ;;  %v268_v60 = vpop.f32.mrb[1].mxu1 }
  0xf7   :  { %v195_v51 = vpop.f32.mrb[0].mxu0  ;;  %v269_v62 = vadd.f32 %v268_v60, %v97_v50  ;;  %v1472_v63 = vpop.f32.mrb[2].mxu1 }
  0xf8   :  { %v196_v52 = vadd.f32 %v195_v51, %v89_v48  ;;  %v197_v53 = vpop.f32.mrb[1].mxu0  ;;  %v2054_v0 = vadd.f32 %v1472_v63, %v97_v50  ;;  %v271_v1 = vpop.f32.mrb[3].mxu1 }
  0xf9   :  { %v198_v54 = vadd.f32 %v197_v53, %v93_v49  ;;  %v199_v55 = vpop.f32.mrb[2].mxu0  ;;  %v2056_v2 = vadd.f32 %v271_v1, %v97_v50 }
  0xfa   :  { %v2048_v57 = vadd.f32 %v199_v55, %v89_v48  ;;  %v201_v58 = vpop.f32.mrb[3].mxu0 }
  0xfb   :  { %v2052_v61 = vadd.f32 %v201_v58, %v93_v49 }
  0xfd   :  { %v1475_v9 = vpop.f32.mrb[4].mxu1 }
  0xfe   :  { %v2064_v12 = vadd.f32 %v1475_v9, %v97_v50  ;;  %v284_v13 = vpop.f32.mrb[5].mxu1 }
  0xff   :  { %v205_v3 = vpop.f32.mrb[4].mxu0  ;;  %v2068_v17 = vadd.f32 %v284_v13, %v97_v50  ;;  %v1476_v20 = vpop.f32.mrb[6].mxu1 }
 0x100   :  { %v2058_v5 = vadd.f32 %v205_v3, %v89_v48  ;;  %v207_v6 = vpop.f32.mrb[5].mxu0  ;;  %v2070_v22 = vadd.f32 %v1476_v20, %v97_v50  ;;  %v287_v29 = vpop.f32.mrb[7].mxu1 }
 0x101   :  { %v2060_v7 = vadd.f32 %v207_v6, %v93_v49  ;;  %v209_v8 = vpop.f32.mrb[6].mxu0  ;;  %v2072_v44 = vadd.f32 %v287_v29, %v97_v50 }
 0x102   :  { %v2062_v10 = vadd.f32 %v209_v8, %v89_v48  ;;  %v211_v11 = vpop.f32.mrb[7].mxu0  ;;  %2419 = vst [vmem:[#allocation6_spill] sm:$0xff] %v2070_v22 }
 0x103   :  { %v2066_v15 = vadd.f32 %v211_v11, %v93_v49 }
 0x107   :  { %v215_v45 = vpop.f32.mrb[8].mxu0 }
 0x108   :  { %v2074_v46 = vadd.f32 %v215_v45, %v89_v48  ;;  %v217_v47 = vpop.f32.mrb[9].mxu0 }
 0x109   :  { %v2076_v51 = vadd.f32 %v217_v47, %v93_v49  ;;  %v219_v53 = vpop.f32.mrb[10].mxu0 }
 0x10a   :  { %v2078_v55 = vadd.f32 %v219_v53, %v89_v48  ;;  %v221_v56 = vpop.f32.mrb[11].mxu0 }
 0x10b   :  { %v2080_v58 = vadd.f32 %v221_v56, %v93_v49 }
 0x10f   :  { %v225_v60 = vpop.f32.mrb[12].mxu0 }
 0x110   :  { %v2082_v63 = vadd.f32 %v225_v60, %v89_v48  ;;  %v227_v1 = vpop.f32.mrb[13].mxu0 }
 0x111   :  { %v2084_v3 = vadd.f32 %v227_v1, %v93_v49  ;;  %v229_v50 = vpop.f32.mrb[14].mxu0 }
 0x112   :  { %v2086_v6 = vadd.f32 %v229_v50, %v89_v48  ;;  %v231_v8 = vpop.f32.mrb[15].mxu0  ;;  %v2093_v48 = vld [vmem:[%s2411_s4] ss:$0 sm:$0xff] }
 0x113   :  { %v2088_v9 = vadd.f32 %v231_v8, %v93_v49 }
 0x114   :  { %2420 = vst [vmem:[#allocation7_spill] sm:$0xff] %v2086_v6 }
 0x115   :  { %2421 = vst [vmem:[#allocation8_spill] sm:$0xff] %v2088_v9  ;;  %v509_v47 = vpop.f32.mrb[8].mxu1 }
 0x116   :  { %v1495_v4 = vpop.f32.mrb[9].mxu1 }
 0x117   :  { %v468_v11 = vpop.f32.mrb[16].mxu0  ;;  %v512_v60 = vpop.f32.mrb[10].mxu1 }
 0x118   :  { %v515_v13 = vadd.f32 %v468_v11, %v196_v52  ;;  %v470_v20 = vpop.f32.mrb[17].mxu0  ;;  %v1496_v21 = vpop.f32.mrb[11].mxu1  ;;  %v525_v52 = vadd.f32 %v2093_v48, %v509_v47  ;;  %v2423_v47 = vmov 0  }
 0x119   :  { %v520_v29 = vadd.f32 %v470_v20, %v198_v54  ;;  %v472_v45 = vpop.f32.mrb[18].mxu0 }
 0x11a   :  { %v516_v53 = vmul.f32 0.5, %v515_v13  ;;  %v473_v56 = vpop.f32.mrb[19].mxu0 }
 0x11b   :  { %v521_v1 = vmul.f32 0.5, %v520_v29 }
 0x11c   :  { %1742 = vtanh.f32 %v516_v53 }
 0x11d   :  { %1744 = vtanh.f32 %v521_v1 }
 0x126   :  { %v1743_v49 = vpop.eup %1742 }
 0x127   :  { %v518_v50 = vadd.f32 1.0, %v1743_v49  ;;  %v1745_v11 = vpop.eup %1744 }
 0x128   :  { %v523_v4 = vadd.f32 1.0, %v1745_v11 }
 0x129   :  { %v519_v54 = vmul.f32 0.5, %v518_v50 }
 0x12a   :  { %v524_v20 = vmul.f32 0.5, %v523_v4 }
 0x12b   :  { %v526_v8 = vmul.f32 %v525_v52, %v519_v54 }
 0x12c   :  { %v529_v45 = vsub.f32 1.0, %v524_v20  ;;  %v531_v29 = vmul.f32 0.0, %v524_v20 }
 0x12d   :  { %v527_v13 = vadd.f32 %v526_v8, %v269_v62  ;;  %v2422_v62 = vmov 0.0  }
 0x12f   :  { %1746 = vtanh.f32 %v527_v13 }
 0x139   :  { %v1747_v21 = vpop.eup %1746 }
 0x13a   :  { %v530_v53 = vmul.f32 %v1747_v21, %v529_v45 }
 0x13c   :  { %v2096_v56 = vadd.f32 %v531_v29, %v530_v53 }
 0x13e   :  { %v533_v60 = vpack.c.bf16 %v2096_v56, %v2096_v56 }
 0x140   :  { %567 = vmatmul.mubr.bf16.vlgmr.msra.gmra.mrb[20].mxu0 %v533_v60  ;;  %1514 = vmatmul.mubr.bf16.vlgmr.msra.gmra.mrb[12].mxu1 %v533_v60 }
 0x141   :  { %635 = vmatpush1.bf16.msra.mxu0 %v1903_v16  ;;  %1518 = vmatpush3.bf16.msra.mxu1 %v1920_v23 }
 0x142   :  { %636 = vmatprep.subr.bf16.mxu0 %v1906_v18  ;;  %1519 = vmatprep.subr.bf16.mxu1 %v2422_v62 }
 0x143   :  { %666 = vmatprep.mubr.bf16.mxu0 %v2423_v47  ;;  %1533 = vmatprep.mubr.msk.bf16.mxu1 %vm1833_vm2, %v2422_v62 }
 0x145   :  { %637 = vmatpush1.bf16.msra.mxu0 %v1908_v19  ;;  %1520 = vmatpush3.bf16.msra.mxu1 %v1929_v25 }
 0x146   :  { %638 = vmatprep.subr.bf16.mxu0 %v1923_v24  ;;  %1521 = vmatprep.subr.bf16.mxu1 %v2422_v62 }
 0x149   :  { %639 = vmatpush1.bf16.msra.mxu0 %v1932_v26  ;;  %1522 = vmatpush3.bf16.msra.mxu1 %v1938_v28 }
 0x14a   :  { %640 = vmatprep.subr.bf16.mxu0 %v1935_v27  ;;  %1523 = vmatprep.subr.bf16.mxu1 %v2422_v62 }
 0x14d   :  { %641 = vmatpush1.bf16.msra.mxu0 %v1946_v30  ;;  %1524 = vmatpush3.bf16.msra.mxu1 %v1954_v32 }
 0x14e   :  { %642 = vmatprep.subr.bf16.mxu0 %v1950_v31  ;;  %1525 = vmatprep.subr.bf16.mxu1 %v2422_v62 }
 0x151   :  { %643 = vmatpush1.bf16.msra.mxu0 %v1960_v33  ;;  %1526 = vmatpush3.bf16.msra.mxu1 %v1966_v35 }
 0x152   :  { %644 = vmatprep.subr.bf16.mxu0 %v1963_v34  ;;  %1527 = vmatprep.subr.bf16.mxu1 %v2422_v62 }
 0x155   :  { %645 = vmatpush1.bf16.msra.mxu0 %v1971_v36  ;;  %1528 = vmatpush3.bf16.msra.mxu1 %v1978_v38 }
 0x156   :  { %646 = vmatprep.subr.bf16.mxu0 %v1975_v37  ;;  %1529 = vmatprep.subr.bf16.mxu1 %v2422_v62 }
 0x159   :  { %647 = vmatpush1.bf16.msra.mxu0 %v1982_v39  ;;  %1530 = vmatpush3.bf16.msra.mxu1 %v1988_v41 }
 0x15a   :  { %648 = vmatprep.subr.bf16.mxu0 %v1985_v40  ;;  %1531 = vmatprep.subr.bf16.mxu1 %v2422_v62 }
 0x15d   :  { %649 = vmatpush1.bf16.msra.mxu0 %v1993_v42  ;;  %1532 = vmatpush3.bf16.msra.mxu1 %v1998_v43 }
 0x15e   :  { %734 = vmatprep.subr.bf16.mxu0 %v1900_v14  ;;  %1537 = vmatprep.subr.bf16.mxu1 %v2422_v62 }
 0x213   :  { %v568_v1 = vpop.f32.mrb[20].mxu0  ;;  %v609_v49 = vpop.f32.mrb[12].mxu1 }
 0x214   :  { %v615_v50 = vadd.f32 %v568_v1, %v2048_v57  ;;  %v570_v52 = vpop.f32.mrb[21].mxu0  ;;  %v1515_v54 = vpop.f32.mrb[13].mxu1  ;;  %v625_v22 = vadd.f32 %v2093_v48, %v609_v49 }
 0x215   :  { %v620_v8 = vadd.f32 %v570_v52, %v2052_v61  ;;  %v572_v11 = vpop.f32.mrb[22].mxu0  ;;  %v612_v13 = vpop.f32.mrb[14].mxu1 }
 0x216   :  { %v616_v4 = vmul.f32 0.5, %v615_v50  ;;  %v573_v20 = vpop.f32.mrb[23].mxu0  ;;  %v1516_v45 = vpop.f32.mrb[15].mxu1 }
 0x217   :  { %v621_v21 = vmul.f32 0.5, %v620_v8 }
 0x218   :  { %1748 = vtanh.f32 %v616_v4 }
 0x219   :  { %1750 = vtanh.f32 %v621_v21 }
 0x222   :  { %v1749_v29 = vpop.eup %1748 }
 0x223   :  { %v618_v53 = vadd.f32 1.0, %v1749_v29  ;;  %v1751_v6 = vpop.eup %1750 }
 0x224   :  { %v623_v1 = vadd.f32 1.0, %v1751_v6 }
 0x225   :  { %v619_v60 = vmul.f32 0.5, %v618_v53 }
 0x226   :  { %v624_v61 = vmul.f32 0.5, %v623_v1 }
 0x227   :  { %v626_v9 = vmul.f32 %v625_v22, %v619_v60 }
 0x228   :  { %v629_v52 = vsub.f32 1.0, %v624_v61  ;;  %v631_v11 = vmul.f32 %v624_v61, %v2096_v56 }
 0x229   :  { %v627_v57 = vadd.f32 %v626_v9, %v2056_v2 }
 0x22b   :  { %1752 = vtanh.f32 %v627_v57 }
 0x235   :  { %v1753_v54 = vpop.eup %1752 }
 0x236   :  { %v630_v50 = vmul.f32 %v1753_v54, %v629_v52 }
 0x238   :  { %v2140_v13 = vadd.f32 %v631_v11, %v630_v50 }
 0x23a   :  { %v633_v8 = vpack.c.bf16 %v2140_v13, %v2140_v13 }
 0x23c   :  { %667 = vmatmul.mubr.bf16.vlgmr.msra.gmra.mrb[24].mxu0 %v633_v8  ;;  %1534 = vmatmul.mubr.bf16.vlgmr.msra.gmra.mrb[16].mxu1 %v633_v8 }
 0x23d   :  { %735 = vmatpush1.bf16.msra.mxu0 %v1903_v16  ;;  %1538 = vmatpush3.bf16.msra.mxu1 %v1920_v23 }
 0x23e   :  { %736 = vmatprep.subr.bf16.mxu0 %v1906_v18  ;;  %1539 = vmatprep.subr.bf16.mxu1 %v2422_v62 }
 0x23f   :  { %766 = vmatprep.mubr.bf16.mxu0 %v2423_v47  ;;  %1553 = vmatprep.mubr.msk.bf16.mxu1 %vm1833_vm2, %v2422_v62 }
 0x241   :  { %737 = vmatpush1.bf16.msra.mxu0 %v1908_v19  ;;  %1540 = vmatpush3.bf16.msra.mxu1 %v1929_v25 }
 0x242   :  { %738 = vmatprep.subr.bf16.mxu0 %v1923_v24  ;;  %1541 = vmatprep.subr.bf16.mxu1 %v2422_v62 }
 0x245   :  { %739 = vmatpush1.bf16.msra.mxu0 %v1932_v26  ;;  %1542 = vmatpush3.bf16.msra.mxu1 %v1938_v28 }
 0x246   :  { %740 = vmatprep.subr.bf16.mxu0 %v1935_v27  ;;  %1543 = vmatprep.subr.bf16.mxu1 %v2422_v62 }
 0x249   :  { %741 = vmatpush1.bf16.msra.mxu0 %v1946_v30  ;;  %1544 = vmatpush3.bf16.msra.mxu1 %v1954_v32 }
 0x24a   :  { %742 = vmatprep.subr.bf16.mxu0 %v1950_v31  ;;  %1545 = vmatprep.subr.bf16.mxu1 %v2422_v62 }
 0x24d   :  { %743 = vmatpush1.bf16.msra.mxu0 %v1960_v33  ;;  %1546 = vmatpush3.bf16.msra.mxu1 %v1966_v35 }
 0x24e   :  { %744 = vmatprep.subr.bf16.mxu0 %v1963_v34  ;;  %1547 = vmatprep.subr.bf16.mxu1 %v2422_v62 }
 0x251   :  { %745 = vmatpush1.bf16.msra.mxu0 %v1971_v36  ;;  %1548 = vmatpush3.bf16.msra.mxu1 %v1978_v38 }
 0x252   :  { %746 = vmatprep.subr.bf16.mxu0 %v1975_v37  ;;  %1549 = vmatprep.subr.bf16.mxu1 %v2422_v62 }
 0x255   :  { %747 = vmatpush1.bf16.msra.mxu0 %v1982_v39  ;;  %1550 = vmatpush3.bf16.msra.mxu1 %v1988_v41 }
 0x256   :  { %748 = vmatprep.subr.bf16.mxu0 %v1985_v40  ;;  %1551 = vmatprep.subr.bf16.mxu1 %v2422_v62 }
 0x259   :  { %749 = vmatpush1.bf16.msra.mxu0 %v1993_v42  ;;  %1552 = vmatpush3.bf16.msra.mxu1 %v1998_v43 }
 0x25a   :  { %834 = vmatprep.subr.bf16.mxu0 %v1900_v14  ;;  %1557 = vmatprep.subr.bf16.mxu1 %v2422_v62 }
 0x30f   :  { %v668_v2 = vpop.f32.mrb[24].mxu0  ;;  %v709_v22 = vpop.f32.mrb[16].mxu1 }
 0x310   :  { %v715_v6 = vadd.f32 %v668_v2, %v2058_v5  ;;  %v670_v9 = vpop.f32.mrb[25].mxu0  ;;  %v1535_v56 = vpop.f32.mrb[17].mxu1  ;;  %v725_v61 = vadd.f32 %v2093_v48, %v709_v22 }
 0x311   :  { %v720_v49 = vadd.f32 %v670_v9, %v2060_v7  ;;  %v672_v4 = vpop.f32.mrb[26].mxu0  ;;  %v712_v20 = vpop.f32.mrb[18].mxu1 }
 0x312   :  { %v716_v45 = vmul.f32 0.5, %v715_v6  ;;  %v673_v21 = vpop.f32.mrb[27].mxu0  ;;  %v1536_v29 = vpop.f32.mrb[19].mxu1 }
 0x313   :  { %v721_v53 = vmul.f32 0.5, %v720_v49 }
 0x314   :  { %1754 = vtanh.f32 %v716_v45 }
 0x315   :  { %1756 = vtanh.f32 %v721_v53 }
 0x31e   :  { %v1755_v60 = vpop.eup %1754 }
 0x31f   :  { %v718_v57 = vadd.f32 1.0, %v1755_v60  ;;  %v1757_v54 = vpop.eup %1756 }
 0x320   :  { %v723_v50 = vadd.f32 1.0, %v1757_v54 }
 0x321   :  { %v719_v1 = vmul.f32 0.5, %v718_v57 }
 0x322   :  { %v724_v7 = vmul.f32 0.5, %v723_v50 }
 0x323   :  { %v726_v52 = vmul.f32 %v725_v61, %v719_v1 }
 0x324   :  { %v729_v11 = vsub.f32 1.0, %v724_v7  ;;  %v731_v6 = vmul.f32 %v724_v7, %v2140_v13 }
 0x325   :  { %v727_v5 = vadd.f32 %v726_v52, %v2050_v59 }
 0x327   :  { %1758 = vtanh.f32 %v727_v5 }
 0x331   :  { %v1759_v8 = vpop.eup %1758 }
 0x332   :  { %v730_v2 = vmul.f32 %v1759_v8, %v729_v11 }
 0x334   :  { %v2184_v9 = vadd.f32 %v731_v6, %v730_v2 }
 0x336   :  { %v733_v56 = vpack.c.bf16 %v2184_v9, %v2184_v9 }
 0x338   :  { %767 = vmatmul.mubr.bf16.vlgmr.msra.gmra.mrb[28].mxu0 %v733_v56  ;;  %1554 = vmatmul.mubr.bf16.vlgmr.msra.gmra.mrb[20].mxu1 %v733_v56 }
 0x339   :  { %835 = vmatpush1.bf16.msra.mxu0 %v1903_v16  ;;  %1558 = vmatpush3.bf16.msra.mxu1 %v1920_v23 }
 0x33a   :  { %836 = vmatprep.subr.bf16.mxu0 %v1906_v18  ;;  %1559 = vmatprep.subr.bf16.mxu1 %v2422_v62 }
 0x33b   :  { %866 = vmatprep.mubr.bf16.mxu0 %v2423_v47  ;;  %1573 = vmatprep.mubr.msk.bf16.mxu1 %vm1833_vm2, %v2422_v62 }
 0x33d   :  { %837 = vmatpush1.bf16.msra.mxu0 %v1908_v19  ;;  %1560 = vmatpush3.bf16.msra.mxu1 %v1929_v25 }
 0x33e   :  { %838 = vmatprep.subr.bf16.mxu0 %v1923_v24  ;;  %1561 = vmatprep.subr.bf16.mxu1 %v2422_v62 }
 0x341   :  { %839 = vmatpush1.bf16.msra.mxu0 %v1932_v26  ;;  %1562 = vmatpush3.bf16.msra.mxu1 %v1938_v28 }
 0x342   :  { %840 = vmatprep.subr.bf16.mxu0 %v1935_v27  ;;  %1563 = vmatprep.subr.bf16.mxu1 %v2422_v62 }
 0x345   :  { %841 = vmatpush1.bf16.msra.mxu0 %v1946_v30  ;;  %1564 = vmatpush3.bf16.msra.mxu1 %v1954_v32 }
 0x346   :  { %842 = vmatprep.subr.bf16.mxu0 %v1950_v31  ;;  %1565 = vmatprep.subr.bf16.mxu1 %v2422_v62 }
 0x349   :  { %843 = vmatpush1.bf16.msra.mxu0 %v1960_v33  ;;  %1566 = vmatpush3.bf16.msra.mxu1 %v1966_v35 }
 0x34a   :  { %844 = vmatprep.subr.bf16.mxu0 %v1963_v34  ;;  %1567 = vmatprep.subr.bf16.mxu1 %v2422_v62 }
 0x34d   :  { %845 = vmatpush1.bf16.msra.mxu0 %v1971_v36  ;;  %1568 = vmatpush3.bf16.msra.mxu1 %v1978_v38 }
 0x34e   :  { %846 = vmatprep.subr.bf16.mxu0 %v1975_v37  ;;  %1569 = vmatprep.subr.bf16.mxu1 %v2422_v62 }
 0x351   :  { %847 = vmatpush1.bf16.msra.mxu0 %v1982_v39  ;;  %1570 = vmatpush3.bf16.msra.mxu1 %v1988_v41 }
 0x352   :  { %848 = vmatprep.subr.bf16.mxu0 %v1985_v40  ;;  %1571 = vmatprep.subr.bf16.mxu1 %v2422_v62 }
 0x355   :  { %849 = vmatpush1.bf16.msra.mxu0 %v1993_v42  ;;  %1572 = vmatpush3.bf16.msra.mxu1 %v1998_v43 }
 0x356   :  { %934 = vmatprep.subr.bf16.mxu0 %v1900_v14  ;;  %1577 = vmatprep.subr.bf16.mxu1 %v2422_v62 }
 0x40b   :  { %v768_v59 = vpop.f32.mrb[28].mxu0  ;;  %v809_v13 = vpop.f32.mrb[20].mxu1 }
 0x40c   :  { %v815_v22 = vadd.f32 %v768_v59, %v2062_v10  ;;  %v770_v49 = vpop.f32.mrb[29].mxu0  ;;  %v1555_v4 = vpop.f32.mrb[21].mxu1  ;;  %v825_v54 = vadd.f32 %v2093_v48, %v809_v13 }
 0x40d   :  { %v820_v20 = vadd.f32 %v770_v49, %v2066_v15  ;;  %v772_v45 = vpop.f32.mrb[30].mxu0  ;;  %v812_v21 = vpop.f32.mrb[22].mxu1 }
 0x40e   :  { %v816_v29 = vmul.f32 0.5, %v815_v22  ;;  %v773_v53 = vpop.f32.mrb[31].mxu0  ;;  %v1556_v60 = vpop.f32.mrb[23].mxu1 }
 0x40f   :  { %v821_v57 = vmul.f32 0.5, %v820_v20 }
 0x410   :  { %1760 = vtanh.f32 %v816_v29 }
 0x411   :  { %1762 = vtanh.f32 %v821_v57 }
 0x41a   :  { %v1761_v1 = vpop.eup %1760 }
 0x41b   :  { %v818_v61 = vadd.f32 1.0, %v1761_v1  ;;  %v1763_v50 = vpop.eup %1762 }
 0x41c   :  { %v823_v7 = vadd.f32 1.0, %v1763_v50 }
 0x41d   :  { %v819_v52 = vmul.f32 0.5, %v818_v61 }
 0x41e   :  { %v824_v15 = vmul.f32 0.5, %v823_v7 }
 0x41f   :  { %v826_v5 = vmul.f32 %v825_v54, %v819_v52 }
 0x420   :  { %v829_v11 = vsub.f32 1.0, %v824_v15  ;;  %v831_v6 = vmul.f32 %v824_v15, %v2184_v9 }
 0x421   :  { %v827_v10 = vadd.f32 %v826_v5, %v2054_v0 }
 0x423   :  { %1764 = vtanh.f32 %v827_v10 }
 0x42d   :  { %v1765_v8 = vpop.eup %1764 }
 0x42e   :  { %v830_v2 = vmul.f32 %v1765_v8, %v829_v11 }
 0x430   :  { %v2228_v56 = vadd.f32 %v831_v6, %v830_v2 }
 0x432   :  { %v833_v59 = vpack.c.bf16 %v2228_v56, %v2228_v56 }
 0x434   :  { %867 = vmatmul.mubr.bf16.vlgmr.msra.gmra.mrb[32].mxu0 %v833_v59  ;;  %1574 = vmatmul.mubr.bf16.vlgmr.msra.gmra.mrb[24].mxu1 %v833_v59 }
 0x435   :  { %935 = vmatpush1.bf16.msra.mxu0 %v1903_v16  ;;  %1578 = vmatpush3.bf16.msra.mxu1 %v1920_v23 }
 0x436   :  { %936 = vmatprep.subr.bf16.mxu0 %v1906_v18  ;;  %1579 = vmatprep.subr.bf16.mxu1 %v2422_v62 }
 0x437   :  { %966 = vmatprep.mubr.bf16.mxu0 %v2423_v47  ;;  %1593 = vmatprep.mubr.msk.bf16.mxu1 %vm1833_vm2, %v2422_v62 }
 0x439   :  { %937 = vmatpush1.bf16.msra.mxu0 %v1908_v19  ;;  %1580 = vmatpush3.bf16.msra.mxu1 %v1929_v25 }
 0x43a   :  { %938 = vmatprep.subr.bf16.mxu0 %v1923_v24  ;;  %1581 = vmatprep.subr.bf16.mxu1 %v2422_v62 }
 0x43d   :  { %939 = vmatpush1.bf16.msra.mxu0 %v1932_v26  ;;  %1582 = vmatpush3.bf16.msra.mxu1 %v1938_v28 }
 0x43e   :  { %940 = vmatprep.subr.bf16.mxu0 %v1935_v27  ;;  %1583 = vmatprep.subr.bf16.mxu1 %v2422_v62 }
 0x441   :  { %941 = vmatpush1.bf16.msra.mxu0 %v1946_v30  ;;  %1584 = vmatpush3.bf16.msra.mxu1 %v1954_v32 }
 0x442   :  { %942 = vmatprep.subr.bf16.mxu0 %v1950_v31  ;;  %1585 = vmatprep.subr.bf16.mxu1 %v2422_v62 }
 0x445   :  { %943 = vmatpush1.bf16.msra.mxu0 %v1960_v33  ;;  %1586 = vmatpush3.bf16.msra.mxu1 %v1966_v35 }
 0x446   :  { %944 = vmatprep.subr.bf16.mxu0 %v1963_v34  ;;  %1587 = vmatprep.subr.bf16.mxu1 %v2422_v62 }
 0x449   :  { %945 = vmatpush1.bf16.msra.mxu0 %v1971_v36  ;;  %1588 = vmatpush3.bf16.msra.mxu1 %v1978_v38 }
 0x44a   :  { %946 = vmatprep.subr.bf16.mxu0 %v1975_v37  ;;  %1589 = vmatprep.subr.bf16.mxu1 %v2422_v62 }
 0x44d   :  { %947 = vmatpush1.bf16.msra.mxu0 %v1982_v39  ;;  %1590 = vmatpush3.bf16.msra.mxu1 %v1988_v41 }
 0x44e   :  { %948 = vmatprep.subr.bf16.mxu0 %v1985_v40  ;;  %1591 = vmatprep.subr.bf16.mxu1 %v2422_v62 }
 0x451   :  { %949 = vmatpush1.bf16.msra.mxu0 %v1993_v42  ;;  %1592 = vmatpush3.bf16.msra.mxu1 %v1998_v43 }
 0x452   :  { %1034 = vmatprep.subr.bf16.mxu0 %v1900_v14  ;;  %1597 = vmatprep.subr.bf16.mxu1 %v2422_v62 }
 0x507   :  { %v868_v0 = vpop.f32.mrb[32].mxu0  ;;  %v909_v9 = vpop.f32.mrb[24].mxu1 }
 0x508   :  { %v915_v13 = vadd.f32 %v868_v0, %v2074_v46  ;;  %v870_v22 = vpop.f32.mrb[33].mxu0  ;;  %v1575_v49 = vpop.f32.mrb[25].mxu1  ;;  %v925_v61 = vadd.f32 %v2093_v48, %v909_v9 }
 0x509   :  { %v920_v4 = vadd.f32 %v870_v22, %v2076_v51  ;;  %v872_v20 = vpop.f32.mrb[34].mxu0  ;;  %v912_v45 = vpop.f32.mrb[26].mxu1 }
 0x50a   :  { %v916_v21 = vmul.f32 0.5, %v915_v13  ;;  %v873_v29 = vpop.f32.mrb[35].mxu0  ;;  %v1576_v53 = vpop.f32.mrb[27].mxu1 }
 0x50b   :  { %v921_v60 = vmul.f32 0.5, %v920_v4  ;;  %v1791_v29 = vld [vmem:[#allocation3] ss:$12 sps:$4 sm:$0xff]   ;;  %v1792_v53 = vld [vmem:[#allocation3 + $0x8] ss:$12 sps:$4 sm:$0xff]  }
 0x50c   :  { %1766 = vtanh.f32 %v916_v21 }
 0x50d   :  { %1768 = vtanh.f32 %v921_v60  ;;  %v1794_v60 = vld [vmem:[#allocation3 + $0x18] ss:$12 sps:$4 sm:$0xff]  }
 0x516   :  { %v1767_v57 = vpop.eup %1766 }
 0x517   :  { %v918_v14 = vadd.f32 1.0, %v1767_v57  ;;  %v1769_v54 = vpop.eup %1768  ;;  %v1795_v57 = vld [vmem:[#allocation3 + $0x20] ss:$12 sps:$4 sm:$0xff]  }
 0x518   :  { %v923_v5 = vadd.f32 1.0, %v1769_v54  ;;  %v1801_v54 = vld [vmem:[#allocation3 + $0x50] ss:$12 sps:$4 sm:$0xff]  }
 0x519   :  { %v919_v1 = vmul.f32 0.5, %v918_v14  ;;  %v1796_v14 = vld [vmem:[#allocation3 + $0x34] ss:$12 sps:$4 sm:$0xff]  }
 0x51a   :  { %v924_v51 = vmul.f32 0.5, %v923_v5 }
 0x51b   :  { %v926_v52 = vmul.f32 %v925_v61, %v919_v1  ;;  %v1797_v1 = vld [vmem:[#allocation3 + $0x30] ss:$12 sps:$4 sm:$0xff]   ;;  %v1798_v61 = vld [vmem:[#allocation3 + $0x38] ss:$12 sps:$4 sm:$0xff]  }
 0x51c   :  { %v929_v50 = vsub.f32 1.0, %v924_v51  ;;  %v931_v15 = vmul.f32 %v924_v51, %v2228_v56 }
 0x51d   :  { %v927_v46 = vadd.f32 %v926_v52, %v2068_v17  ;;  %v1799_v52 = vld [vmem:[#allocation3 + $0x4c] ss:$12 sps:$4 sm:$0xff]  }
 0x51f   :  { %1770 = vtanh.f32 %v927_v46  ;;  %v1802_v46 = vld [vmem:[#allocation3 + $0x64] ss:$12 sps:$4 sm:$0xff]  }
 0x529   :  { %v1771_v10 = vpop.eup %1770 }
 0x52a   :  { %v930_v7 = vmul.f32 %v1771_v10, %v929_v50 }
 0x52c   :  { %v2272_v11 = vadd.f32 %v931_v15, %v930_v7 }
 0x52e   :  { %v933_v8 = vpack.c.bf16 %v2272_v11, %v2272_v11 }
 0x530   :  { %967 = vmatmul.mubr.bf16.vlgmr.msra.gmra.mrb[36].mxu0 %v933_v8  ;;  %1594 = vmatmul.mubr.bf16.vlgmr.msra.gmra.mrb[28].mxu1 %v933_v8 }
 0x531   :  { %1035 = vmatpush1.bf16.msra.mxu0 %v1903_v16  ;;  %1598 = vmatpush3.bf16.msra.mxu1 %v1920_v23  ;;  %v1790_v16 = vld [vmem:[#allocation3 + $0x4] ss:$12 sps:$4 sm:$0xff]  }
 0x532   :  { %1036 = vmatprep.subr.bf16.mxu0 %v1906_v18  ;;  %1599 = vmatprep.subr.bf16.mxu1 %v2422_v62 }
 0x533   :  { %1066 = vmatprep.mubr.bf16.mxu0 %v2423_v47  ;;  %1613 = vmatprep.mubr.msk.bf16.mxu1 %vm1833_vm2, %v2422_v62 }
 0x535   :  { %1037 = vmatpush1.bf16.msra.mxu0 %v1908_v19  ;;  %1600 = vmatpush3.bf16.msra.mxu1 %v1929_v25 }
 0x536   :  { %1038 = vmatprep.subr.bf16.mxu0 %v1923_v24  ;;  %1601 = vmatprep.subr.bf16.mxu1 %v2422_v62 }
 0x539   :  { %1039 = vmatpush1.bf16.msra.mxu0 %v1932_v26  ;;  %1602 = vmatpush3.bf16.msra.mxu1 %v1938_v28 }
 0x53a   :  { %1040 = vmatprep.subr.bf16.mxu0 %v1935_v27  ;;  %1603 = vmatprep.subr.bf16.mxu1 %v2422_v62 }
 0x53d   :  { %1041 = vmatpush1.bf16.msra.mxu0 %v1946_v30  ;;  %1604 = vmatpush3.bf16.msra.mxu1 %v1954_v32 }
 0x53e   :  { %1042 = vmatprep.subr.bf16.mxu0 %v1950_v31  ;;  %1605 = vmatprep.subr.bf16.mxu1 %v2422_v62 }
 0x541   :  { %1043 = vmatpush1.bf16.msra.mxu0 %v1960_v33  ;;  %1606 = vmatpush3.bf16.msra.mxu1 %v1966_v35 }
 0x542   :  { %1044 = vmatprep.subr.bf16.mxu0 %v1963_v34  ;;  %1607 = vmatprep.subr.bf16.mxu1 %v2422_v62 }
 0x545   :  { %1045 = vmatpush1.bf16.msra.mxu0 %v1971_v36  ;;  %1608 = vmatpush3.bf16.msra.mxu1 %v1978_v38 }
 0x546   :  { %1046 = vmatprep.subr.bf16.mxu0 %v1975_v37  ;;  %1609 = vmatprep.subr.bf16.mxu1 %v2422_v62 }
 0x549   :  { %1047 = vmatpush1.bf16.msra.mxu0 %v1982_v39  ;;  %1610 = vmatpush3.bf16.msra.mxu1 %v1988_v41 }
 0x54a   :  { %1048 = vmatprep.subr.bf16.mxu0 %v1985_v40  ;;  %1611 = vmatprep.subr.bf16.mxu1 %v2422_v62 }
 0x54d   :  { %1049 = vmatpush1.bf16.msra.mxu0 %v1993_v42  ;;  %1612 = vmatpush3.bf16.msra.mxu1 %v1998_v43 }
 0x54e   :  { %1134 = vmatprep.subr.bf16.mxu0 %v1790_v16  ;;  %1617 = vmatprep.subr.bf16.mxu1 %v2422_v62 }
 0x603   :  { %v968_v18 = vpop.f32.mrb[36].mxu0  ;;  %v1009_v19 = vpop.f32.mrb[28].mxu1 }
 0x604   :  { %v1015_v23 = vadd.f32 %v968_v18, %v2078_v55  ;;  %v970_v24 = vpop.f32.mrb[37].mxu0  ;;  %v1595_v25 = vpop.f32.mrb[29].mxu1  ;;  %v1025_v59 = vadd.f32 %v2093_v48, %v1009_v19 }
 0x605   :  { %v1020_v26 = vadd.f32 %v970_v24, %v2080_v58  ;;  %v972_v27 = vpop.f32.mrb[38].mxu0  ;;  %v1012_v28 = vpop.f32.mrb[30].mxu1 }
 0x606   :  { %v1016_v30 = vmul.f32 0.5, %v1015_v23  ;;  %v973_v31 = vpop.f32.mrb[39].mxu0  ;;  %v1596_v32 = vpop.f32.mrb[31].mxu1  ;;  %v1834_v28 = vmov 0.0|0.0  }
 0x607   :  { %v1021_v17 = vmul.f32 0.5, %v1020_v26  ;;  %v1234_v26 = vld [vmem:[%s2412_s5 + $0x8] sm:$0xff]  ;;  %v1237_v32 = vld [vmem:[%s2412_s5 + $0x20] sm:$0xff] }
 0x608   :  { %1772 = vtanh.f32 %v1016_v30  ;;  %v1235_v30 = vld [vmem:[%s2412_s5 + $0x10] sm:$0xff] }
 0x609   :  { %1774 = vtanh.f32 %v1021_v17  ;;  %v1238_v17 = vld [vmem:[%s2412_s5 + $0x28] sm:$0xff] }
 0x612   :  { %v1773_v2 = vpop.eup %1772 }
 0x613   :  { %v1018_v6 = vadd.f32 1.0, %v1773_v2  ;;  %v1775_v9 = vpop.eup %1774  ;;  %v1679_v2 = vpack.c.bf16 %v1238_v17, %v1237_v32 }
 0x614   :  { %v1023_v13 = vadd.f32 1.0, %v1775_v9  ;;  %v1242_v9 = vld [vmem:[%s2412_s5 + $0x48] sm:$0xff] }
 0x615   :  { %v1019_v56 = vmul.f32 0.5, %v1018_v6  ;;  %v1239_v6 = vld [vmem:[%s2412_s5 + $0x30] sm:$0xff] }
 0x616   :  { %v1024_v58 = vmul.f32 0.5, %v1023_v13  ;;  %v1243_v13 = vld [vmem:[%s2412_s5 + $0x50] sm:$0xff] }
 0x617   :  { %v1026_v0 = vmul.f32 %v1025_v59, %v1019_v56  ;;  %v1240_v56 = vld [vmem:[%s2412_s5 + $0x38] sm:$0xff] }
 0x618   :  { %v1029_v22 = vsub.f32 1.0, %v1024_v58  ;;  %v1031_v20 = vmul.f32 %v1024_v58, %v2272_v11  ;;  %v1682_v59 = vpack.c.bf16 %v1240_v56, %v1239_v6  ;;  %v1244_v58 = vld [vmem:[%s2412_s5 + $0x58] sm:$0xff] }
 0x619   :  { %v1027_v55 = vadd.f32 %v1026_v0, %v2072_v44  ;;  %v1793_v44 = vld [vmem:[#allocation3 + $0x1c] ss:$12 sps:$4 sm:$0xff]  }
 0x61a   :  { %v1241_v0 = vld [vmem:[%s2412_s5 + $0x40] sm:$0xff] }
 0x61b   :  { %1776 = vtanh.f32 %v1027_v55  ;;  %v1685_v55 = vpack.c.bf16 %v1242_v9, %v1241_v0 }
 0x625   :  { %v1777_v49 = vpop.eup %1776 }
 0x626   :  { %v1030_v4 = vmul.f32 %v1777_v49, %v1029_v22  ;;  %v1688_v22 = vpack.c.bf16 %v1244_v58, %v1243_v13  ;;  %v1245_v49 = vld [vmem:[%s2412_s5 + $0x60] sm:$0xff] }
 0x628   :  { %v2315_v45 = vadd.f32 %v1031_v20, %v1030_v4  ;;  %v1246_v4 = vld [vmem:[%s2412_s5 + $0x68] sm:$0xff] }
 0x629   :  { %v1691_v20 = vpack.c.bf16 %v1246_v4, %v1245_v49 }
 0x62a   :  { %v1033_v21 = vpack.c.bf16 %v2315_v45, %v2315_v45 }
 0x62c   :  { %1067 = vmatmul.mubr.bf16.vlgmr.msra.gmra.mrb[40].mxu0 %v1033_v21  ;;  %1614 = vmatmul.mubr.bf16.vlgmr.msra.gmra.mrb[32].mxu1 %v1033_v21  ;;  %v1248_v21 = vld [vmem:[%s2412_s5 + $0x78] sm:$0xff] }
 0x62d   :  { %1135 = vmatpush1.bf16.msra.mxu0 %v1791_v29  ;;  %1618 = vmatpush3.bf16.msra.mxu1 %v1792_v53 }
 0x62e   :  { %1136 = vmatprep.subr.bf16.mxu0 %v1793_v44  ;;  %1619 = vmatprep.subr.bf16.mxu1 %v2422_v62 }
 0x62f   :  { %1166 = vmatprep.mubr.bf16.mxu0 %v2423_v47  ;;  %1633 = vmatprep.mubr.msk.bf16.mxu1 %vm1833_vm2, %v2422_v62  ;;  %v1800_v47 = vld [vmem:[#allocation3 + $0x48] ss:$12 sps:$4 sm:$0xff]  }
 0x631   :  { %1137 = vmatpush1.bf16.msra.mxu0 %v1794_v60  ;;  %1620 = vmatpush3.bf16.msra.mxu1 %v1795_v57  ;;  %v2424_v60 = vld [vmem:[#allocation7_spill] sm:$0xff] }
 0x632   :  { %1138 = vmatprep.subr.bf16.mxu0 %v1796_v14  ;;  %1621 = vmatprep.subr.bf16.mxu1 %v2422_v62 }
 0x635   :  { %1139 = vmatpush1.bf16.msra.mxu0 %v1797_v1  ;;  %1622 = vmatpush3.bf16.msra.mxu1 %v1798_v61  ;;  %v2425_v61 = vld [vmem:[#allocation8_spill] sm:$0xff] }
 0x636   :  { %1140 = vmatprep.subr.bf16.mxu0 %v1799_v52  ;;  %1623 = vmatprep.subr.bf16.mxu1 %v2422_v62 }
 0x639   :  { %1141 = vmatpush1.bf16.msra.mxu0 %v1800_v47  ;;  %1624 = vmatpush3.bf16.msra.mxu1 %v1801_v54 }
 0x63a   :  { %1142 = vmatprep.subr.bf16.mxu0 %v1802_v46  ;;  %1625 = vmatprep.subr.bf16.mxu1 %v2422_v62 }
 0x63d   :  { %1143 = vmatpush1.bf16.msra.mxu0 %v1960_v33  ;;  %1626 = vmatpush3.bf16.msra.mxu1 %v1966_v35 }
 0x63e   :  { %1144 = vmatprep.subr.bf16.mxu0 %v1963_v34  ;;  %1627 = vmatprep.subr.bf16.mxu1 %v2422_v62 }
 0x641   :  { %1145 = vmatpush1.bf16.msra.mxu0 %v1971_v36  ;;  %1628 = vmatpush3.bf16.msra.mxu1 %v1978_v38 }
 0x642   :  { %1146 = vmatprep.subr.bf16.mxu0 %v1975_v37  ;;  %1629 = vmatprep.subr.bf16.mxu1 %v2422_v62 }
 0x645   :  { %1147 = vmatpush1.bf16.msra.mxu0 %v1982_v39  ;;  %1630 = vmatpush3.bf16.msra.mxu1 %v1988_v41 }
 0x646   :  { %1148 = vmatprep.subr.bf16.mxu0 %v1985_v40  ;;  %1631 = vmatprep.subr.bf16.mxu1 %v2422_v62 }
 0x649   :  { %1149 = vmatpush1.bf16.msra.mxu0 %v1993_v42  ;;  %1632 = vmatpush3.bf16.msra.mxu1 %v1998_v43 }
 0x64a   :  { %1672 = vmatprep.subr.bf16.mxu0 %v1834_v28 }
 0x6ff   :  { %v1068_v33 = vpop.f32.mrb[40].mxu0  ;;  %v1109_v34 = vpop.f32.mrb[32].mxu1 }
 0x700   :  { %v1115_v35 = vadd.f32 %v1068_v33, %v2082_v63  ;;  %v1070_v36 = vpop.f32.mrb[41].mxu0  ;;  %v1615_v37 = vpop.f32.mrb[33].mxu1  ;;  %v1125_v43 = vadd.f32 %v2093_v48, %v1109_v34 }
 0x701   :  { %v1120_v38 = vadd.f32 %v1070_v36, %v2084_v3  ;;  %v1072_v5 = vpop.f32.mrb[42].mxu0  ;;  %v1112_v39 = vpop.f32.mrb[34].mxu1 }
 0x702   :  { %v1116_v51 = vmul.f32 0.5, %v1115_v35  ;;  %v1073_v41 = vpop.f32.mrb[43].mxu0  ;;  %v1616_v50 = vpop.f32.mrb[35].mxu1 }
 0x703   :  { %v1121_v40 = vmul.f32 0.5, %v1120_v38  ;;  %v2426_v41 = vld [vmem:[#allocation6_spill] sm:$0xff] }
 0x704   :  { %1778 = vtanh.f32 %v1116_v51 }
 0x705   :  { %1780 = vtanh.f32 %v1121_v40 }
 0x70e   :  { %v1779_v10 = vpop.eup %1778 }
 0x70f   :  { %v1118_v42 = vadd.f32 1.0, %v1779_v10  ;;  %v1781_v11 = vpop.eup %1780 }
 0x710   :  { %v1123_v8 = vadd.f32 1.0, %v1781_v11 }
 0x711   :  { %v1119_v7 = vmul.f32 0.5, %v1118_v42 }
 0x712   :  { %v1124_v3 = vmul.f32 0.5, %v1123_v8 }
 0x713   :  { %v1126_v15 = vmul.f32 %v1125_v43, %v1119_v7 }
 0x714   :  { %v1129_v16 = vsub.f32 1.0, %v1124_v3  ;;  %v1131_v23 = vmul.f32 %v1124_v3, %v2315_v45  ;;  %v1247_v45 = vld [vmem:[%s2412_s5 + $0x70] sm:$0xff] }
 0x715   :  { %v1127_v63 = vadd.f32 %v1126_v15, %v2064_v12  ;;  %v1233_v12 = vld [vmem:[%s2412_s5] sm:$0xff]  ;;  %v1694_v29 = vpack.c.bf16 %v1248_v21, %v1247_v45 }
 0x716   :  { %v1673_v27 = vpack.c.bf16 %v1234_v26, %v1233_v12 }
 0x717   :  { %1782 = vtanh.f32 %v1127_v63  ;;  %v1372_v63 = vld [vmem:[#allocation2] ss:$0 sm:$0xff] }
 0x721   :  { %v1783_v18 = vpop.eup %1782 }
 0x722   :  { %v1130_v19 = vmul.f32 %v1783_v18, %v1129_v16 }
 0x724   :  { %v2345_v24 = vadd.f32 %v1131_v23, %v1130_v19 }
 0x726   :  { %v1133_v25 = vpack.c.bf16 %v2345_v24, %v2345_v24 }
 0x728   :  { %1167 = vmatmul.mubr.bf16.vlgmr.msra.gmra.mrb[44].mxu0 %v1133_v25  ;;  %1634 = vmatmul.mubr.bf16.vlgmr.msra.gmra.mrb[36].mxu1 %v1133_v25 }
 0x729   :  { %1669 = vmatprep.mubr.msk.f32.mxu0 %vm1833_vm2, %v2422_v62  ;;  %1674 = vmatpush3.bf16.msra.mxu0 %v1673_v27  ;;  %v1236_v62 = vld [vmem:[%s2412_s5 + $0x18] sm:$0xff] }
 0x72a   :  { %1675 = vmatprep.subr.bf16.mxu0 %v1834_v28  ;;  %v1676_v31 = vpack.c.bf16 %v1236_v62, %v1235_v30 }
 0x72d   :  { %1677 = vmatpush3.bf16.msra.mxu0 %v1676_v31 }
 0x72e   :  { %1678 = vmatprep.subr.bf16.mxu0 %v1834_v28 }
 0x731   :  { %1680 = vmatpush3.bf16.msra.mxu0 %v1679_v2 }
 0x732   :  { %1681 = vmatprep.subr.bf16.mxu0 %v1834_v28 }
 0x735   :  { %1683 = vmatpush3.bf16.msra.mxu0 %v1682_v59 }
 0x736   :  { %1684 = vmatprep.subr.bf16.mxu0 %v1834_v28 }
 0x739   :  { %1686 = vmatpush3.bf16.msra.mxu0 %v1685_v55 }
 0x73a   :  { %1687 = vmatprep.subr.bf16.mxu0 %v1834_v28 }
 0x73d   :  { %1689 = vmatpush3.bf16.msra.mxu0 %v1688_v22 }
 0x73e   :  { %1690 = vmatprep.subr.bf16.mxu0 %v1834_v28 }
 0x741   :  { %1692 = vmatpush3.bf16.msra.mxu0 %v1691_v20 }
 0x742   :  { %1693 = vmatprep.subr.bf16.mxu0 %v1834_v28 }
 0x745   :  { %1695 = vmatpush3.bf16.msra.mxu0 %v1694_v29 }
 0x7fb   :  { %v1168_v53 = vpop.f32.mrb[44].mxu0  ;;  %v1209_v44 = vpop.f32.mrb[36].mxu1 }
 0x7fc   :  { %v1215_v57 = vadd.f32 %v1168_v53, %v2424_v60  ;;  %v1170_v14 = vpop.f32.mrb[45].mxu0  ;;  %v1635_v1 = vpop.f32.mrb[37].mxu1  ;;  %v1225_v5 = vadd.f32 %v2093_v48, %v1209_v44 }
 0x7fd   :  { %v1220_v52 = vadd.f32 %v1170_v14, %v2425_v61  ;;  %v1172_v47 = vpop.f32.mrb[46].mxu0  ;;  %v1212_v54 = vpop.f32.mrb[38].mxu1 }
 0x7fe   :  { %v1216_v46 = vmul.f32 0.5, %v1215_v57  ;;  %v1173_v33 = vpop.f32.mrb[47].mxu0  ;;  %v1636_v34 = vpop.f32.mrb[39].mxu1 }
 0x7ff   :  { %v1221_v35 = vmul.f32 0.5, %v1220_v52 }
 0x800   :  { %1784 = vtanh.f32 %v1216_v46 }
 0x801   :  { %1786 = vtanh.f32 %v1221_v35 }
 0x80a   :  { %v1785_v36 = vpop.eup %1784 }
 0x80b   :  { %v1218_v37 = vadd.f32 1.0, %v1785_v36  ;;  %v1787_v51 = vpop.eup %1786 }
 0x80c   :  { %v1223_v40 = vadd.f32 1.0, %v1787_v51 }
 0x80d   :  { %v1219_v38 = vmul.f32 0.5, %v1218_v37 }
 0x80e   :  { %v1224_v10 = vmul.f32 0.5, %v1223_v40 }
 0x80f   :  { %v1226_v39 = vmul.f32 %v1225_v5, %v1219_v38 }
 0x810   :  { %v1229_v42 = vsub.f32 1.0, %v1224_v10  ;;  %v1231_v15 = vmul.f32 %v1224_v10, %v2345_v24 }
 0x811   :  { %v1227_v50 = vadd.f32 %v1226_v39, %v2426_v41 }
 0x813   :  { %1788 = vtanh.f32 %v1227_v50 }
 0x81d   :  { %v1789_v7 = vpop.eup %1788 }
 0x81e   :  { %v1230_v43 = vmul.f32 %v1789_v7, %v1229_v42 }
 0x820   :  { %v1232_v11 = vadd.f32 %v1231_v15, %v1230_v43 }
 0x822   :  { %1670 = vmatmul.mubr.f32.vlgmr.msra.gmra.mrb[48].mxu0 %v1232_v11 }
 0x8f5   :  { %v1315_v8 = vpop.f32.mrb[48].mxu0 }
 0x8f6   :  { %v1326_v3 = vadd.f32 %v1372_v63, %v1315_v8  ;;  %v1671_v16 = vpop.f32.mrb[49].mxu0 }
 0x8f8   :  { %1328 = vst.msk [vmem:[%s2414_s7] sm:$0x3] %vm1327_vm3, %v1326_v3 }
 0x8f9   :  { %1333 = vsyncpa [#allocation4], 1 }

</bundles_post_ra>
